<compile_context>
chip_gen: v7x
topology: tpu7x:2x2x1
jax: 0.10.0
libtpu: 0.0.40
codegen_flags: <defaults>
</compile_context>

<pallas_src>
import functools
import math

import jax
import jax.numpy as jnp
from jax.experimental import pallas as pl
from jax.experimental.pallas import tpu as pltpu


def _tr_encoder_kernel(Bt, L, E, H, eps,
                       x_ref,
                       wq_ref, wk_ref, wv_ref, bq_ref, bk_ref, bv_ref,
                       wo_ref, bo_ref, g1_ref, be1_ref,
                       w1_ref, bm1_ref, w2_ref, bm2_ref, g2_ref, be2_ref,
                       o_ref):
    """One grid step == one batch tile of Bt sequences; M = Bt*L rows."""
    Dh = E // H
    M = Bt * L
    mm_dtype = wq_ref.dtype                       # matmul operand dtype (bf16/f32)

    x32 = x_ref[...].astype(jnp.float32)          # (M, E) f32 for residual / LN
    xc = x32.astype(mm_dtype)

    # ---- QKV projections (1/sqrt(Dh) already folded into wq / bq) ----
    q = jnp.dot(xc, wq_ref[...], preferred_element_type=jnp.float32) + bq_ref[...]
    k = jnp.dot(xc, wk_ref[...], preferred_element_type=jnp.float32) + bk_ref[...]
    v = jnp.dot(xc, wv_ref[...], preferred_element_type=jnp.float32) + bv_ref[...]

    # ---- multi-head self-attention: static head loop, batched over Bt ----
    head_outs = []
    for h in range(H):                            # static unroll (H is small)
        sl = slice(h * Dh, (h + 1) * Dh)
        qh = q[:, sl].reshape(Bt, L, Dh).astype(mm_dtype)
        kh = k[:, sl].reshape(Bt, L, Dh).astype(mm_dtype)
        vh = v[:, sl].reshape(Bt, L, Dh).astype(mm_dtype)
        s = jnp.einsum('bqd,bkd->bqk', qh, kh,
                       preferred_element_type=jnp.float32)       # (Bt, L, L)
        s = s - jnp.max(s, axis=-1, keepdims=True)
        p = jnp.exp(s)
        p = p * pl.reciprocal(jnp.sum(p, axis=-1, keepdims=True), approx=True)
        oh = jnp.einsum('bqk,bkd->bqd', p.astype(mm_dtype), vh,
                        preferred_element_type=jnp.float32)      # (Bt, L, Dh)
        head_outs.append(oh.reshape(M, Dh))
    attn = jnp.concatenate(head_outs, axis=-1)                   # (M, E)

    dx = jnp.dot(attn.astype(mm_dtype), wo_ref[...],
                 preferred_element_type=jnp.float32) + bo_ref[...]

    # ---- residual + LayerNorm 1 (f32) ----
    y = x32 + dx
    mu = jnp.mean(y, axis=-1, keepdims=True)
    var = jnp.mean((y - mu) ** 2, axis=-1, keepdims=True)
    y = (y - mu) * jax.lax.rsqrt(var + eps) * g1_ref[...] + be1_ref[...]

    # ---- MLP: Linear -> (Dropout=id) -> ReLU -> Linear ----
    h1 = jnp.dot(y.astype(mm_dtype), w1_ref[...],
                 preferred_element_type=jnp.float32) + bm1_ref[...]
    h1 = jnp.maximum(h1, 0.0)
    dx2 = jnp.dot(h1.astype(mm_dtype), w2_ref[...],
                  preferred_element_type=jnp.float32) + bm2_ref[...]

    # ---- residual + LayerNorm 2 (f32) ----
    z = y + dx2
    mu2 = jnp.mean(z, axis=-1, keepdims=True)
    var2 = jnp.mean((z - mu2) ** 2, axis=-1, keepdims=True)
    z = (z - mu2) * jax.lax.rsqrt(var2 + eps) * g2_ref[...] + be2_ref[...]

    o_ref[...] = z.astype(o_ref.dtype)


def _largest_divisor_at_most(n, cap):
    for d in range(min(n, max(cap, 1)), 0, -1):
        if n % d == 0:
            return d
    return 1


def tr_encoder_block(x_lbe, params, n_attn_heads, eps=1e-5,
                     matmul_dtype=jnp.bfloat16, batch_tile=None):
    """x_lbe: (L, B, E) -- same convention as the PyTorch module."""
    L, B, E = x_lbe.shape
    H = n_attn_heads
    assert E % H == 0
    n_hidden = params["w1"].shape[0]
    scale = 1.0 / math.sqrt(E // H)

    # Pre-split QKV, fold the attention scale into wq/bq, pre-transpose so the
    # kernel always does row-major `x @ W`, and store matmul weights in
    # `matmul_dtype` (bf16 MXU operands on v6e/v7x; biases/LN params stay f32).
    Wqkv, bqkv = params["in_proj_weight"], params["in_proj_bias"]
    wq = (Wqkv[:E].T * scale).astype(matmul_dtype)                   # (E, E)
    wk = Wqkv[E:2 * E].T.astype(matmul_dtype)                        # (E, E)
    wv = Wqkv[2 * E:].T.astype(matmul_dtype)                         # (E, E)
    bq = (bqkv[:E] * scale).reshape(1, E).astype(jnp.float32)
    bk = bqkv[E:2 * E].reshape(1, E).astype(jnp.float32)
    bv = bqkv[2 * E:].reshape(1, E).astype(jnp.float32)
    wo = params["out_proj_weight"].T.astype(matmul_dtype)            # (E, E)
    bo = params["out_proj_bias"].reshape(1, E).astype(jnp.float32)
    g1 = params["ln1_gamma"].reshape(1, E).astype(jnp.float32)
    be1 = params["ln1_beta"].reshape(1, E).astype(jnp.float32)
    w1 = params["w1"].T.astype(matmul_dtype)                         # (E, n_hidden)
    bm1 = params["b1"].reshape(1, n_hidden).astype(jnp.float32)
    w2 = params["w2"].T.astype(matmul_dtype)                         # (n_hidden, E)
    bm2 = params["b2"].reshape(1, E).astype(jnp.float32)
    g2 = params["ln2_gamma"].reshape(1, E).astype(jnp.float32)
    be2 = params["ln2_beta"].reshape(1, E).astype(jnp.float32)
    weights = [wq, wk, wv, bq, bk, bv, wo, bo, g1, be1,
               w1, bm1, w2, bm2, g2, be2]

    # Pick a batch tile so M = batch_tile*L approaches MXU-friendly row counts.
    if batch_tile is None:
        batch_tile = _largest_divisor_at_most(B, max(1, 512 // max(L, 1)))
    Bt = batch_tile
    assert B % Bt == 0
    grid = (B // Bt,)

    # (L, B, E) -> (B*L, E): matmuls see M = Bt*L rows per step.
    # NOTE: if the caller can supply (B, L, E) directly this transpose (one
    # extra HBM read+write of the activations) disappears.
    x2d = jnp.transpose(x_lbe, (1, 0, 2)).reshape(B * L, E)

    kernel = functools.partial(_tr_encoder_kernel, Bt, L, E, H, eps)

    def full_spec(a):
        return pl.BlockSpec(a.shape, lambda b: (0, 0))

    out2d = pl.pallas_call(
        kernel,
        out_shape=jax.ShapeDtypeStruct((B * L, E), x_lbe.dtype),
        grid=grid,
        in_specs=[pl.BlockSpec((Bt * L, E), lambda b: (b, 0))]
                 + [full_spec(a) for a in weights],
        out_specs=pl.BlockSpec((Bt * L, E), lambda b: (b, 0)),
        compiler_params=pltpu.CompilerParams(dimension_semantics=("parallel",)),
    )(x2d, *weights)

    return out2d.reshape(B, L, E).transpose(1, 0, 2)                 # (L, B, E)


def _reference(x, p, H, eps=1e-5):
    """Plain-JAX reference mirroring torch.nn.MultiheadAttention (eval mode)."""
    L, B, E = x.shape
    Dh = E // H
    qkv = jnp.einsum('lbe,fe->lbf', x, p["in_proj_weight"]) + p["in_proj_bias"]
    q, k, v = qkv[..., :E], qkv[..., E:2 * E], qkv[..., 2 * E:]
    q = q * (1.0 / math.sqrt(Dh))
    qh = q.reshape(L, B, H, Dh); kh = k.reshape(L, B, H, Dh); vh = v.reshape(L, B, H, Dh)
    s = jnp.einsum('qbhd,kbhd->bhqk', qh, kh)
    pr = jax.nn.softmax(s, axis=-1)
    o = jnp.einsum('bhqk,kbhd->qbhd', pr, vh).reshape(L, B, E)
    dx = jnp.einsum('lbe,fe->lbf', o, p["out_proj_weight"]) + p["out_proj_bias"]

    def ln(y, g, b):
        mu = y.mean(-1, keepdims=True)
        var = ((y - mu) ** 2).mean(-1, keepdims=True)
        return (y - mu) / jnp.sqrt(var + eps) * g + b

    y = ln(x + dx, p["ln1_gamma"], p["ln1_beta"])
    h1 = jnp.maximum(jnp.einsum('lbe,he->lbh', y, p["w1"]) + p["b1"], 0.0)
    dx2 = jnp.einsum('lbh,eh->lbe', h1, p["w2"]) + p["b2"]
    return ln(y + dx2, p["ln2_gamma"], p["ln2_beta"])


def init_params(key, n_features, n_hidden):
    E, Hh = n_features, n_hidden
    ks = jax.random.split(key, 6)
    s = 0.02
    return {
        "in_proj_weight":  s * jax.random.normal(ks[0], (3 * E, E), jnp.float32),
        "in_proj_bias":    jnp.zeros((3 * E,), jnp.float32),
        "out_proj_weight": s * jax.random.normal(ks[1], (E, E), jnp.float32),
        "out_proj_bias":   jnp.zeros((E,), jnp.float32),
        "ln1_gamma":       jnp.ones((E,), jnp.float32),
        "ln1_beta":        jnp.zeros((E,), jnp.float32),
        "w1":              s * jax.random.normal(ks[2], (Hh, E), jnp.float32),
        "b1":              jnp.zeros((Hh,), jnp.float32),
        "w2":              s * jax.random.normal(ks[3], (E, Hh), jnp.float32),
        "b2":              jnp.zeros((E,), jnp.float32),
        "ln2_gamma":       jnp.ones((E,), jnp.float32),
        "ln2_beta":        jnp.zeros((E,), jnp.float32),
    }


if __name__ == "__main__":
    L, B, E = 8, 2, 32          # max_seq_length, batch_size, n_features
    n_attn_heads = 4
    n_hidden = 64

    key = jax.random.PRNGKey(0)
    kx, kp = jax.random.split(key)
    x = jax.random.normal(kx, (L, B, E), jnp.float32)
    params = init_params(kp, E, n_hidden)

    ref = _reference(x, params, n_attn_heads)

    # f32 matmul path (v5e-friendly); approx softmax reciprocal => ~1e-4 error.
    out_f32 = jax.block_until_ready(
        tr_encoder_block(x, params, n_attn_heads, matmul_dtype=jnp.float32))
    assert out_f32.shape == (L, B, E)
    assert jnp.allclose(out_f32, ref, atol=5e-3, rtol=5e-3), \
        f"f32 path max abs err = {jnp.max(jnp.abs(out_f32 - ref))}"

    # bf16 matmul-operand path (MXU-native on v6e/v7x); looser tolerance.
    out_bf16 = jax.block_until_ready(
        tr_encoder_block(x, params, n_attn_heads, matmul_dtype=jnp.bfloat16))
    assert out_bf16.shape == (L, B, E)
    assert jnp.allclose(out_bf16, ref, atol=3e-2, rtol=3e-2), \
        f"bf16 path max abs err = {jnp.max(jnp.abs(out_bf16 - ref))}"

    print("KERNEL_OK")
</pallas_src>

<mosaic_0001>
module attributes {stable_mosaic.version = 11 : i64} {
  func.func @_tr_encoder_kernel(%arg0: i32, %arg1: memref<16x32xf32, #tpu.memory_space<vmem>>, %arg2: memref<32x32xf32, #tpu.memory_space<vmem>>, %arg3: memref<32x32xf32, #tpu.memory_space<vmem>>, %arg4: memref<32x32xf32, #tpu.memory_space<vmem>>, %arg5: memref<1x32xf32, #tpu.memory_space<vmem>>, %arg6: memref<1x32xf32, #tpu.memory_space<vmem>>, %arg7: memref<1x32xf32, #tpu.memory_space<vmem>>, %arg8: memref<32x32xf32, #tpu.memory_space<vmem>>, %arg9: memref<1x32xf32, #tpu.memory_space<vmem>>, %arg10: memref<1x32xf32, #tpu.memory_space<vmem>>, %arg11: memref<1x32xf32, #tpu.memory_space<vmem>>, %arg12: memref<32x64xf32, #tpu.memory_space<vmem>>, %arg13: memref<1x64xf32, #tpu.memory_space<vmem>>, %arg14: memref<64x32xf32, #tpu.memory_space<vmem>>, %arg15: memref<1x32xf32, #tpu.memory_space<vmem>>, %arg16: memref<1x32xf32, #tpu.memory_space<vmem>>, %arg17: memref<1x32xf32, #tpu.memory_space<vmem>>, %arg18: memref<16x32xf32, #tpu.memory_space<vmem>>) attributes {dimension_semantics = [#tpu.dimension_semantics<parallel>], iteration_bounds = array<i64: 1>, scalar_prefetch = 0 : i64, scratch_operands = 0 : i64, tpu.core_type = #tpu.core_type<tc>, window_params = [{transform_indices = @transform_0, window_bounds = array<i64: 16, 32>}, {pipeline_mode = #tpu.pipeline_mode<synchronous>, transform_indices = @transform_1, window_bounds = array<i64: 32, 32>}, {pipeline_mode = #tpu.pipeline_mode<synchronous>, transform_indices = @transform_2, window_bounds = array<i64: 32, 32>}, {pipeline_mode = #tpu.pipeline_mode<synchronous>, transform_indices = @transform_3, window_bounds = array<i64: 32, 32>}, {pipeline_mode = #tpu.pipeline_mode<synchronous>, transform_indices = @transform_4, window_bounds = array<i64: 1, 32>}, {pipeline_mode = #tpu.pipeline_mode<synchronous>, transform_indices = @transform_5, window_bounds = array<i64: 1, 32>}, {pipeline_mode = #tpu.pipeline_mode<synchronous>, transform_indices = @transform_6, window_bounds = array<i64: 1, 32>}, {pipeline_mode = #tpu.pipeline_mode<synchronous>, transform_indices = @transform_7, window_bounds = array<i64: 32, 32>}, {pipeline_mode = #tpu.pipeline_mode<synchronous>, transform_indices = @transform_8, window_bounds = array<i64: 1, 32>}, {pipeline_mode = #tpu.pipeline_mode<synchronous>, transform_indices = @transform_9, window_bounds = array<i64: 1, 32>}, {pipeline_mode = #tpu.pipeline_mode<synchronous>, transform_indices = @transform_10, window_bounds = array<i64: 1, 32>}, {pipeline_mode = #tpu.pipeline_mode<synchronous>, transform_indices = @transform_11, window_bounds = array<i64: 32, 64>}, {pipeline_mode = #tpu.pipeline_mode<synchronous>, transform_indices = @transform_12, window_bounds = array<i64: 1, 64>}, {pipeline_mode = #tpu.pipeline_mode<synchronous>, transform_indices = @transform_13, window_bounds = array<i64: 64, 32>}, {pipeline_mode = #tpu.pipeline_mode<synchronous>, transform_indices = @transform_14, window_bounds = array<i64: 1, 32>}, {pipeline_mode = #tpu.pipeline_mode<synchronous>, transform_indices = @transform_15, window_bounds = array<i64: 1, 32>}, {pipeline_mode = #tpu.pipeline_mode<synchronous>, transform_indices = @transform_16, window_bounds = array<i64: 1, 32>}, {transform_indices = @transform_17, window_bounds = array<i64: 16, 32>}]} {
    %c0 = arith.constant 0 : index
    %c0_0 = arith.constant 0 : index
    %0 = vector.load %arg1[%c0, %c0_0] : memref<16x32xf32, #tpu.memory_space<vmem>>, vector<16x32xf32>
    %c0_1 = arith.constant 0 : index
    %c0_2 = arith.constant 0 : index
    %1 = vector.load %arg2[%c0_1, %c0_2] : memref<32x32xf32, #tpu.memory_space<vmem>>, vector<32x32xf32>
    %cst = arith.constant dense<0.000000e+00> : vector<16x32xf32>
    %2 = tpu.matmul %0, %1, %cst {dimension_numbers = #tpu.dot_dimension_numbers<[1], [0], [0], [1], [0, 0, 1, 1], [], []>} : vector<16x32xf32>, vector<32x32xf32>, vector<16x32xf32> -> vector<16x32xf32>
    %c0_3 = arith.constant 0 : index
    %c0_4 = arith.constant 0 : index
    %3 = vector.load %arg5[%c0_3, %c0_4] : memref<1x32xf32, #tpu.memory_space<vmem>>, vector<1x32xf32>
    %4 = vector.broadcast %3 : vector<1x32xf32> to vector<16x32xf32>
    %5 = arith.addf %2, %4 : vector<16x32xf32>
    %c0_5 = arith.constant 0 : index
    %c0_6 = arith.constant 0 : index
    %6 = vector.load %arg3[%c0_5, %c0_6] : memref<32x32xf32, #tpu.memory_space<vmem>>, vector<32x32xf32>
    %cst_7 = arith.constant dense<0.000000e+00> : vector<16x32xf32>
    %7 = tpu.matmul %0, %6, %cst_7 {dimension_numbers = #tpu.dot_dimension_numbers<[1], [0], [0], [1], [0, 0, 1, 1], [], []>} : vector<16x32xf32>, vector<32x32xf32>, vector<16x32xf32> -> vector<16x32xf32>
    %c0_8 = arith.constant 0 : index
    %c0_9 = arith.constant 0 : index
    %8 = vector.load %arg6[%c0_8, %c0_9] : memref<1x32xf32, #tpu.memory_space<vmem>>, vector<1x32xf32>
    %9 = vector.broadcast %8 : vector<1x32xf32> to vector<16x32xf32>
    %10 = arith.addf %7, %9 : vector<16x32xf32>
    %c0_10 = arith.constant 0 : index
    %c0_11 = arith.constant 0 : index
    %11 = vector.load %arg4[%c0_10, %c0_11] : memref<32x32xf32, #tpu.memory_space<vmem>>, vector<32x32xf32>
    %cst_12 = arith.constant dense<0.000000e+00> : vector<16x32xf32>
    %12 = tpu.matmul %0, %11, %cst_12 {dimension_numbers = #tpu.dot_dimension_numbers<[1], [0], [0], [1], [0, 0, 1, 1], [], []>} : vector<16x32xf32>, vector<32x32xf32>, vector<16x32xf32> -> vector<16x32xf32>
    %c0_13 = arith.constant 0 : index
    %c0_14 = arith.constant 0 : index
    %13 = vector.load %arg7[%c0_13, %c0_14] : memref<1x32xf32, #tpu.memory_space<vmem>>, vector<1x32xf32>
    %14 = vector.broadcast %13 : vector<1x32xf32> to vector<16x32xf32>
    %15 = arith.addf %12, %14 : vector<16x32xf32>
    %16 = vector.extract_strided_slice %5 {offsets = [0, 0], sizes = [16, 8], strides = [1, 1]} : vector<16x32xf32> to vector<16x8xf32>
    %17 = vector.shape_cast %16 : vector<16x8xf32> to vector<2x8x8xf32>
    %18 = vector.extract_strided_slice %10 {offsets = [0, 0], sizes = [16, 8], strides = [1, 1]} : vector<16x32xf32> to vector<16x8xf32>
    %19 = vector.shape_cast %18 : vector<16x8xf32> to vector<2x8x8xf32>
    %20 = vector.extract_strided_slice %15 {offsets = [0, 0], sizes = [16, 8], strides = [1, 1]} : vector<16x32xf32> to vector<16x8xf32>
    %21 = vector.shape_cast %20 : vector<16x8xf32> to vector<2x8x8xf32>
    "tpu.trace_start"() <{level = 10 : i32, message = "bqd,bkd->bqk"}> : () -> ()
    %cst_15 = arith.constant dense<0.000000e+00> : vector<2x8x8xf32>
    %22 = tpu.matmul %17, %19, %cst_15 {dimension_numbers = #tpu.dot_dimension_numbers<[2], [2], [1], [1], [0, 0, 0, 1, 1, 1], [0], [0]>} : vector<2x8x8xf32>, vector<2x8x8xf32>, vector<2x8x8xf32> -> vector<2x8x8xf32>
    "tpu.trace_stop"() : () -> ()
    %cst_16 = arith.constant dense<0xFF800000> : vector<2x8xf32>
    %23 = vector.multi_reduction <maximumf>, %22, %cst_16 [2] : vector<2x8x8xf32> to vector<2x8xf32>
    %24 = vector.shape_cast %23 : vector<2x8xf32> to vector<2x8x1xf32>
    %25 = vector.broadcast %24 : vector<2x8x1xf32> to vector<2x8x8xf32>
    %26 = arith.subf %22, %25 : vector<2x8x8xf32>
    %27 = math.exp %26 : vector<2x8x8xf32>
    %cst_17 = arith.constant dense<0.000000e+00> : vector<2x8xf32>
    %28 = vector.multi_reduction <add>, %27, %cst_17 [2] : vector<2x8x8xf32> to vector<2x8xf32>
    %29 = vector.shape_cast %28 : vector<2x8xf32> to vector<2x8x1xf32>
    %30 = tpu.reciprocal %29 {approx = true} : vector<2x8x1xf32> -> vector<2x8x1xf32>
    %31 = vector.broadcast %30 : vector<2x8x1xf32> to vector<2x8x8xf32>
    %32 = arith.mulf %27, %31 : vector<2x8x8xf32>
    "tpu.trace_start"() <{level = 10 : i32, message = "bqk,bkd->bqd"}> : () -> ()
    %cst_18 = arith.constant dense<0.000000e+00> : vector<2x8x8xf32>
    %33 = tpu.matmul %32, %21, %cst_18 {dimension_numbers = #tpu.dot_dimension_numbers<[2], [1], [1], [2], [0, 0, 0, 1, 1, 2], [0], [0]>} : vector<2x8x8xf32>, vector<2x8x8xf32>, vector<2x8x8xf32> -> vector<2x8x8xf32>
    "tpu.trace_stop"() : () -> ()
    %34 = vector.shape_cast %33 : vector<2x8x8xf32> to vector<16x8xf32>
    %35 = vector.extract_strided_slice %5 {offsets = [0, 8], sizes = [16, 8], strides = [1, 1]} : vector<16x32xf32> to vector<16x8xf32>
    %36 = vector.shape_cast %35 : vector<16x8xf32> to vector<2x8x8xf32>
    %37 = vector.extract_strided_slice %10 {offsets = [0, 8], sizes = [16, 8], strides = [1, 1]} : vector<16x32xf32> to vector<16x8xf32>
    %38 = vector.shape_cast %37 : vector<16x8xf32> to vector<2x8x8xf32>
    %39 = vector.extract_strided_slice %15 {offsets = [0, 8], sizes = [16, 8], strides = [1, 1]} : vector<16x32xf32> to vector<16x8xf32>
    %40 = vector.shape_cast %39 : vector<16x8xf32> to vector<2x8x8xf32>
    "tpu.trace_start"() <{level = 10 : i32, message = "bqd,bkd->bqk"}> : () -> ()
    %cst_19 = arith.constant dense<0.000000e+00> : vector<2x8x8xf32>
    %41 = tpu.matmul %36, %38, %cst_19 {dimension_numbers = #tpu.dot_dimension_numbers<[2], [2], [1], [1], [0, 0, 0, 1, 1, 1], [0], [0]>} : vector<2x8x8xf32>, vector<2x8x8xf32>, vector<2x8x8xf32> -> vector<2x8x8xf32>
    "tpu.trace_stop"() : () -> ()
    %cst_20 = arith.constant dense<0xFF800000> : vector<2x8xf32>
    %42 = vector.multi_reduction <maximumf>, %41, %cst_20 [2] : vector<2x8x8xf32> to vector<2x8xf32>
    %43 = vector.shape_cast %42 : vector<2x8xf32> to vector<2x8x1xf32>
    %44 = vector.broadcast %43 : vector<2x8x1xf32> to vector<2x8x8xf32>
    %45 = arith.subf %41, %44 : vector<2x8x8xf32>
    %46 = math.exp %45 : vector<2x8x8xf32>
    %cst_21 = arith.constant dense<0.000000e+00> : vector<2x8xf32>
    %47 = vector.multi_reduction <add>, %46, %cst_21 [2] : vector<2x8x8xf32> to vector<2x8xf32>
    %48 = vector.shape_cast %47 : vector<2x8xf32> to vector<2x8x1xf32>
    %49 = tpu.reciprocal %48 {approx = true} : vector<2x8x1xf32> -> vector<2x8x1xf32>
    %50 = vector.broadcast %49 : vector<2x8x1xf32> to vector<2x8x8xf32>
    %51 = arith.mulf %46, %50 : vector<2x8x8xf32>
    "tpu.trace_start"() <{level = 10 : i32, message = "bqk,bkd->bqd"}> : () -> ()
    %cst_22 = arith.constant dense<0.000000e+00> : vector<2x8x8xf32>
    %52 = tpu.matmul %51, %40, %cst_22 {dimension_numbers = #tpu.dot_dimension_numbers<[2], [1], [1], [2], [0, 0, 0, 1, 1, 2], [0], [0]>} : vector<2x8x8xf32>, vector<2x8x8xf32>, vector<2x8x8xf32> -> vector<2x8x8xf32>
    "tpu.trace_stop"() : () -> ()
    %53 = vector.shape_cast %52 : vector<2x8x8xf32> to vector<16x8xf32>
    %54 = vector.extract_strided_slice %5 {offsets = [0, 16], sizes = [16, 8], strides = [1, 1]} : vector<16x32xf32> to vector<16x8xf32>
    %55 = vector.shape_cast %54 : vector<16x8xf32> to vector<2x8x8xf32>
    %56 = vector.extract_strided_slice %10 {offsets = [0, 16], sizes = [16, 8], strides = [1, 1]} : vector<16x32xf32> to vector<16x8xf32>
    %57 = vector.shape_cast %56 : vector<16x8xf32> to vector<2x8x8xf32>
    %58 = vector.extract_strided_slice %15 {offsets = [0, 16], sizes = [16, 8], strides = [1, 1]} : vector<16x32xf32> to vector<16x8xf32>
    %59 = vector.shape_cast %58 : vector<16x8xf32> to vector<2x8x8xf32>
    "tpu.trace_start"() <{level = 10 : i32, message = "bqd,bkd->bqk"}> : () -> ()
    %cst_23 = arith.constant dense<0.000000e+00> : vector<2x8x8xf32>
    %60 = tpu.matmul %55, %57, %cst_23 {dimension_numbers = #tpu.dot_dimension_numbers<[2], [2], [1], [1], [0, 0, 0, 1, 1, 1], [0], [0]>} : vector<2x8x8xf32>, vector<2x8x8xf32>, vector<2x8x8xf32> -> vector<2x8x8xf32>
    "tpu.trace_stop"() : () -> ()
    %cst_24 = arith.constant dense<0xFF800000> : vector<2x8xf32>
    %61 = vector.multi_reduction <maximumf>, %60, %cst_24 [2] : vector<2x8x8xf32> to vector<2x8xf32>
    %62 = vector.shape_cast %61 : vector<2x8xf32> to vector<2x8x1xf32>
    %63 = vector.broadcast %62 : vector<2x8x1xf32> to vector<2x8x8xf32>
    %64 = arith.subf %60, %63 : vector<2x8x8xf32>
    %65 = math.exp %64 : vector<2x8x8xf32>
    %cst_25 = arith.constant dense<0.000000e+00> : vector<2x8xf32>
    %66 = vector.multi_reduction <add>, %65, %cst_25 [2] : vector<2x8x8xf32> to vector<2x8xf32>
    %67 = vector.shape_cast %66 : vector<2x8xf32> to vector<2x8x1xf32>
    %68 = tpu.reciprocal %67 {approx = true} : vector<2x8x1xf32> -> vector<2x8x1xf32>
    %69 = vector.broadcast %68 : vector<2x8x1xf32> to vector<2x8x8xf32>
    %70 = arith.mulf %65, %69 : vector<2x8x8xf32>
    "tpu.trace_start"() <{level = 10 : i32, message = "bqk,bkd->bqd"}> : () -> ()
    %cst_26 = arith.constant dense<0.000000e+00> : vector<2x8x8xf32>
    %71 = tpu.matmul %70, %59, %cst_26 {dimension_numbers = #tpu.dot_dimension_numbers<[2], [1], [1], [2], [0, 0, 0, 1, 1, 2], [0], [0]>} : vector<2x8x8xf32>, vector<2x8x8xf32>, vector<2x8x8xf32> -> vector<2x8x8xf32>
    "tpu.trace_stop"() : () -> ()
    %72 = vector.shape_cast %71 : vector<2x8x8xf32> to vector<16x8xf32>
    %73 = vector.extract_strided_slice %5 {offsets = [0, 24], sizes = [16, 8], strides = [1, 1]} : vector<16x32xf32> to vector<16x8xf32>
    %74 = vector.shape_cast %73 : vector<16x8xf32> to vector<2x8x8xf32>
    %75 = vector.extract_strided_slice %10 {offsets = [0, 24], sizes = [16, 8], strides = [1, 1]} : vector<16x32xf32> to vector<16x8xf32>
    %76 = vector.shape_cast %75 : vector<16x8xf32> to vector<2x8x8xf32>
    %77 = vector.extract_strided_slice %15 {offsets = [0, 24], sizes = [16, 8], strides = [1, 1]} : vector<16x32xf32> to vector<16x8xf32>
    %78 = vector.shape_cast %77 : vector<16x8xf32> to vector<2x8x8xf32>
    "tpu.trace_start"() <{level = 10 : i32, message = "bqd,bkd->bqk"}> : () -> ()
    %cst_27 = arith.constant dense<0.000000e+00> : vector<2x8x8xf32>
    %79 = tpu.matmul %74, %76, %cst_27 {dimension_numbers = #tpu.dot_dimension_numbers<[2], [2], [1], [1], [0, 0, 0, 1, 1, 1], [0], [0]>} : vector<2x8x8xf32>, vector<2x8x8xf32>, vector<2x8x8xf32> -> vector<2x8x8xf32>
    "tpu.trace_stop"() : () -> ()
    %cst_28 = arith.constant dense<0xFF800000> : vector<2x8xf32>
    %80 = vector.multi_reduction <maximumf>, %79, %cst_28 [2] : vector<2x8x8xf32> to vector<2x8xf32>
    %81 = vector.shape_cast %80 : vector<2x8xf32> to vector<2x8x1xf32>
    %82 = vector.broadcast %81 : vector<2x8x1xf32> to vector<2x8x8xf32>
    %83 = arith.subf %79, %82 : vector<2x8x8xf32>
    %84 = math.exp %83 : vector<2x8x8xf32>
    %cst_29 = arith.constant dense<0.000000e+00> : vector<2x8xf32>
    %85 = vector.multi_reduction <add>, %84, %cst_29 [2] : vector<2x8x8xf32> to vector<2x8xf32>
    %86 = vector.shape_cast %85 : vector<2x8xf32> to vector<2x8x1xf32>
    %87 = tpu.reciprocal %86 {approx = true} : vector<2x8x1xf32> -> vector<2x8x1xf32>
    %88 = vector.broadcast %87 : vector<2x8x1xf32> to vector<2x8x8xf32>
    %89 = arith.mulf %84, %88 : vector<2x8x8xf32>
    "tpu.trace_start"() <{level = 10 : i32, message = "bqk,bkd->bqd"}> : () -> ()
    %cst_30 = arith.constant dense<0.000000e+00> : vector<2x8x8xf32>
    %90 = tpu.matmul %89, %78, %cst_30 {dimension_numbers = #tpu.dot_dimension_numbers<[2], [1], [1], [2], [0, 0, 0, 1, 1, 2], [0], [0]>} : vector<2x8x8xf32>, vector<2x8x8xf32>, vector<2x8x8xf32> -> vector<2x8x8xf32>
    "tpu.trace_stop"() : () -> ()
    %91 = vector.shape_cast %90 : vector<2x8x8xf32> to vector<16x8xf32>
    %92 = tpu.concatenate %34, %53, %72, %91 in 1 : vector<16x8xf32>, vector<16x8xf32>, vector<16x8xf32>, vector<16x8xf32> -> vector<16x32xf32>
    %c0_31 = arith.constant 0 : index
    %c0_32 = arith.constant 0 : index
    %93 = vector.load %arg8[%c0_31, %c0_32] : memref<32x32xf32, #tpu.memory_space<vmem>>, vector<32x32xf32>
    %cst_33 = arith.constant dense<0.000000e+00> : vector<16x32xf32>
    %94 = tpu.matmul %92, %93, %cst_33 {dimension_numbers = #tpu.dot_dimension_numbers<[1], [0], [0], [1], [0, 0, 1, 1], [], []>} : vector<16x32xf32>, vector<32x32xf32>, vector<16x32xf32> -> vector<16x32xf32>
    %c0_34 = arith.constant 0 : index
    %c0_35 = arith.constant 0 : index
    %95 = vector.load %arg9[%c0_34, %c0_35] : memref<1x32xf32, #tpu.memory_space<vmem>>, vector<1x32xf32>
    %96 = vector.broadcast %95 : vector<1x32xf32> to vector<16x32xf32>
    %97 = arith.addf %94, %96 : vector<16x32xf32>
    %98 = arith.addf %0, %97 : vector<16x32xf32>
    %cst_36 = arith.constant dense<0.000000e+00> : vector<16xf32>
    %99 = vector.multi_reduction <add>, %98, %cst_36 [1] : vector<16x32xf32> to vector<16xf32>
    %100 = vector.shape_cast %99 : vector<16xf32> to vector<16x1xf32>
    %cst_37 = arith.constant 3.200000e+01 : f32
    %101 = vector.broadcast %cst_37 : f32 to vector<16x1xf32>
    %102 = arith.divf %100, %101 : vector<16x1xf32>
    %103 = vector.broadcast %102 : vector<16x1xf32> to vector<16x32xf32>
    %104 = arith.subf %98, %103 : vector<16x32xf32>
    %105 = arith.mulf %104, %104 : vector<16x32xf32>
    %cst_38 = arith.constant dense<0.000000e+00> : vector<16xf32>
    %106 = vector.multi_reduction <add>, %105, %cst_38 [1] : vector<16x32xf32> to vector<16xf32>
    %107 = vector.shape_cast %106 : vector<16xf32> to vector<16x1xf32>
    %cst_39 = arith.constant 3.200000e+01 : f32
    %108 = vector.broadcast %cst_39 : f32 to vector<16x1xf32>
    %109 = arith.divf %107, %108 : vector<16x1xf32>
    %110 = vector.broadcast %102 : vector<16x1xf32> to vector<16x32xf32>
    %111 = arith.subf %98, %110 : vector<16x32xf32>
    %cst_40 = arith.constant 9.99999974E-6 : f32
    %112 = vector.broadcast %cst_40 : f32 to vector<16x1xf32>
    %113 = arith.addf %109, %112 : vector<16x1xf32>
    %114 = math.rsqrt %113 : vector<16x1xf32>
    %115 = vector.broadcast %114 : vector<16x1xf32> to vector<16x32xf32>
    %116 = arith.mulf %111, %115 : vector<16x32xf32>
    %c0_41 = arith.constant 0 : index
    %c0_42 = arith.constant 0 : index
    %117 = vector.load %arg10[%c0_41, %c0_42] : memref<1x32xf32, #tpu.memory_space<vmem>>, vector<1x32xf32>
    %118 = vector.broadcast %117 : vector<1x32xf32> to vector<16x32xf32>
    %119 = arith.mulf %116, %118 : vector<16x32xf32>
    %c0_43 = arith.constant 0 : index
    %c0_44 = arith.constant 0 : index
    %120 = vector.load %arg11[%c0_43, %c0_44] : memref<1x32xf32, #tpu.memory_space<vmem>>, vector<1x32xf32>
    %121 = vector.broadcast %120 : vector<1x32xf32> to vector<16x32xf32>
    %122 = arith.addf %119, %121 : vector<16x32xf32>
    %c0_45 = arith.constant 0 : index
    %c0_46 = arith.constant 0 : index
    %123 = vector.load %arg12[%c0_45, %c0_46] : memref<32x64xf32, #tpu.memory_space<vmem>>, vector<32x64xf32>
    %cst_47 = arith.constant dense<0.000000e+00> : vector<16x64xf32>
    %124 = tpu.matmul %122, %123, %cst_47 {dimension_numbers = #tpu.dot_dimension_numbers<[1], [0], [0], [1], [0, 0, 1, 1], [], []>} : vector<16x32xf32>, vector<32x64xf32>, vector<16x64xf32> -> vector<16x64xf32>
    %c0_48 = arith.constant 0 : index
    %c0_49 = arith.constant 0 : index
    %125 = vector.load %arg13[%c0_48, %c0_49] : memref<1x64xf32, #tpu.memory_space<vmem>>, vector<1x64xf32>
    %126 = vector.broadcast %125 : vector<1x64xf32> to vector<16x64xf32>
    %127 = arith.addf %124, %126 : vector<16x64xf32>
    %cst_50 = arith.constant 0.000000e+00 : f32
    %128 = vector.broadcast %cst_50 : f32 to vector<16x64xf32>
    %129 = arith.maximumf %127, %128 : vector<16x64xf32>
    %c0_51 = arith.constant 0 : index
    %c0_52 = arith.constant 0 : index
    %130 = vector.load %arg14[%c0_51, %c0_52] : memref<64x32xf32, #tpu.memory_space<vmem>>, vector<64x32xf32>
    %cst_53 = arith.constant dense<0.000000e+00> : vector<16x32xf32>
    %131 = tpu.matmul %129, %130, %cst_53 {dimension_numbers = #tpu.dot_dimension_numbers<[1], [0], [0], [1], [0, 0, 1, 1], [], []>} : vector<16x64xf32>, vector<64x32xf32>, vector<16x32xf32> -> vector<16x32xf32>
    %c0_54 = arith.constant 0 : index
    %c0_55 = arith.constant 0 : index
    %132 = vector.load %arg15[%c0_54, %c0_55] : memref<1x32xf32, #tpu.memory_space<vmem>>, vector<1x32xf32>
    %133 = vector.broadcast %132 : vector<1x32xf32> to vector<16x32xf32>
    %134 = arith.addf %131, %133 : vector<16x32xf32>
    %135 = arith.addf %122, %134 : vector<16x32xf32>
    %cst_56 = arith.constant dense<0.000000e+00> : vector<16xf32>
    %136 = vector.multi_reduction <add>, %135, %cst_56 [1] : vector<16x32xf32> to vector<16xf32>
    %137 = vector.shape_cast %136 : vector<16xf32> to vector<16x1xf32>
    %cst_57 = arith.constant 3.200000e+01 : f32
    %138 = vector.broadcast %cst_57 : f32 to vector<16x1xf32>
    %139 = arith.divf %137, %138 : vector<16x1xf32>
    %140 = vector.broadcast %139 : vector<16x1xf32> to vector<16x32xf32>
    %141 = arith.subf %135, %140 : vector<16x32xf32>
    %142 = arith.mulf %141, %141 : vector<16x32xf32>
    %cst_58 = arith.constant dense<0.000000e+00> : vector<16xf32>
    %143 = vector.multi_reduction <add>, %142, %cst_58 [1] : vector<16x32xf32> to vector<16xf32>
    %144 = vector.shape_cast %143 : vector<16xf32> to vector<16x1xf32>
    %cst_59 = arith.constant 3.200000e+01 : f32
    %145 = vector.broadcast %cst_59 : f32 to vector<16x1xf32>
    %146 = arith.divf %144, %145 : vector<16x1xf32>
    %147 = vector.broadcast %139 : vector<16x1xf32> to vector<16x32xf32>
    %148 = arith.subf %135, %147 : vector<16x32xf32>
    %cst_60 = arith.constant 9.99999974E-6 : f32
    %149 = vector.broadcast %cst_60 : f32 to vector<16x1xf32>
    %150 = arith.addf %146, %149 : vector<16x1xf32>
    %151 = math.rsqrt %150 : vector<16x1xf32>
    %152 = vector.broadcast %151 : vector<16x1xf32> to vector<16x32xf32>
    %153 = arith.mulf %148, %152 : vector<16x32xf32>
    %c0_61 = arith.constant 0 : index
    %c0_62 = arith.constant 0 : index
    %154 = vector.load %arg16[%c0_61, %c0_62] : memref<1x32xf32, #tpu.memory_space<vmem>>, vector<1x32xf32>
    %155 = vector.broadcast %154 : vector<1x32xf32> to vector<16x32xf32>
    %156 = arith.mulf %153, %155 : vector<16x32xf32>
    %c0_63 = arith.constant 0 : index
    %c0_64 = arith.constant 0 : index
    %157 = vector.load %arg17[%c0_63, %c0_64] : memref<1x32xf32, #tpu.memory_space<vmem>>, vector<1x32xf32>
    %158 = vector.broadcast %157 : vector<1x32xf32> to vector<16x32xf32>
    %159 = arith.addf %156, %158 : vector<16x32xf32>
    %c0_65 = arith.constant 0 : index
    %c0_66 = arith.constant 0 : index
    %160 = vector.load %arg18[%c0_65, %c0_66] : memref<16x32xf32, #tpu.memory_space<vmem>>, vector<16x32xf32>
    tpu.vector_store %arg18[%c0_65, %c0_66], %159 {strides = array<i32>} : memref<16x32xf32, #tpu.memory_space<vmem>>, vector<16x32xf32>,
    return
  }
  func.func @transform_0(%arg0: i32) -> (i32, i32) {
    %c0_i32 = arith.constant 0 : i32
    %c0_i32_0 = arith.constant 0 : i32
    return %arg0, %c0_i32 : i32, i32
  }
  func.func @transform_1(%arg0: i32) -> (i32, i32) {
    %c0_i32 = arith.constant 0 : i32
    %c0_i32_0 = arith.constant 0 : i32
    %c0_i32_1 = arith.constant 0 : i32
    return %c0_i32, %c0_i32_0 : i32, i32
  }
  func.func @transform_2(%arg0: i32) -> (i32, i32) {
    %c0_i32 = arith.constant 0 : i32
    %c0_i32_0 = arith.constant 0 : i32
    %c0_i32_1 = arith.constant 0 : i32
    return %c0_i32, %c0_i32_0 : i32, i32
  }
  func.func @transform_3(%arg0: i32) -> (i32, i32) {
    %c0_i32 = arith.constant 0 : i32
    %c0_i32_0 = arith.constant 0 : i32
    %c0_i32_1 = arith.constant 0 : i32
    return %c0_i32, %c0_i32_0 : i32, i32
  }
  func.func @transform_4(%arg0: i32) -> (i32, i32) {
    %c0_i32 = arith.constant 0 : i32
    %c0_i32_0 = arith.constant 0 : i32
    %c0_i32_1 = arith.constant 0 : i32
    return %c0_i32, %c0_i32_0 : i32, i32
  }
  func.func @transform_5(%arg0: i32) -> (i32, i32) {
    %c0_i32 = arith.constant 0 : i32
    %c0_i32_0 = arith.constant 0 : i32
    %c0_i32_1 = arith.constant 0 : i32
    return %c0_i32, %c0_i32_0 : i32, i32
  }
  func.func @transform_6(%arg0: i32) -> (i32, i32) {
    %c0_i32 = arith.constant 0 : i32
    %c0_i32_0 = arith.constant 0 : i32
    %c0_i32_1 = arith.constant 0 : i32
    return %c0_i32, %c0_i32_0 : i32, i32
  }
  func.func @transform_7(%arg0: i32) -> (i32, i32) {
    %c0_i32 = arith.constant 0 : i32
    %c0_i32_0 = arith.constant 0 : i32
    %c0_i32_1 = arith.constant 0 : i32
    return %c0_i32, %c0_i32_0 : i32, i32
  }
  func.func @transform_8(%arg0: i32) -> (i32, i32) {
    %c0_i32 = arith.constant 0 : i32
    %c0_i32_0 = arith.constant 0 : i32
    %c0_i32_1 = arith.constant 0 : i32
    return %c0_i32, %c0_i32_0 : i32, i32
  }
  func.func @transform_9(%arg0: i32) -> (i32, i32) {
    %c0_i32 = arith.constant 0 : i32
    %c0_i32_0 = arith.constant 0 : i32
    %c0_i32_1 = arith.constant 0 : i32
    return %c0_i32, %c0_i32_0 : i32, i32
  }
  func.func @transform_10(%arg0: i32) -> (i32, i32) {
    %c0_i32 = arith.constant 0 : i32
    %c0_i32_0 = arith.constant 0 : i32
    %c0_i32_1 = arith.constant 0 : i32
    return %c0_i32, %c0_i32_0 : i32, i32
  }
  func.func @transform_11(%arg0: i32) -> (i32, i32) {
    %c0_i32 = arith.constant 0 : i32
    %c0_i32_0 = arith.constant 0 : i32
    %c0_i32_1 = arith.constant 0 : i32
    return %c0_i32, %c0_i32_0 : i32, i32
  }
  func.func @transform_12(%arg0: i32) -> (i32, i32) {
    %c0_i32 = arith.constant 0 : i32
    %c0_i32_0 = arith.constant 0 : i32
    %c0_i32_1 = arith.constant 0 : i32
    return %c0_i32, %c0_i32_0 : i32, i32
  }
  func.func @transform_13(%arg0: i32) -> (i32, i32) {
    %c0_i32 = arith.constant 0 : i32
    %c0_i32_0 = arith.constant 0 : i32
    %c0_i32_1 = arith.constant 0 : i32
    return %c0_i32, %c0_i32_0 : i32, i32
  }
  func.func @transform_14(%arg0: i32) -> (i32, i32) {
    %c0_i32 = arith.constant 0 : i32
    %c0_i32_0 = arith.constant 0 : i32
    %c0_i32_1 = arith.constant 0 : i32
    return %c0_i32, %c0_i32_0 : i32, i32
  }
  func.func @transform_15(%arg0: i32) -> (i32, i32) {
    %c0_i32 = arith.constant 0 : i32
    %c0_i32_0 = arith.constant 0 : i32
    %c0_i32_1 = arith.constant 0 : i32
    return %c0_i32, %c0_i32_0 : i32, i32
  }
  func.func @transform_16(%arg0: i32) -> (i32, i32) {
    %c0_i32 = arith.constant 0 : i32
    %c0_i32_0 = arith.constant 0 : i32
    %c0_i32_1 = arith.constant 0 : i32
    return %c0_i32, %c0_i32_0 : i32, i32
  }
  func.func @transform_17(%arg0: i32) -> (i32, i32) {
    %c0_i32 = arith.constant 0 : i32
    %c0_i32_0 = arith.constant 0 : i32
    return %arg0, %c0_i32 : i32, i32
  }
}

</mosaic_0001>

<bundles_post_ra>
// kernel: tpu_custom_call.1
= control target key start
LH: loop header
LB: loop body
LE: loop exit
PB: predicated region body
PF: predicated region fallthrough
CT: control target
= control target key end

     0   :  { %s3031_s0 = inlined_call_operand.hbm [shape: f32[16,32], index: 0, kind: input, shape index: {}]   ;;  %s3032_s1 = inlined_call_operand.vmem [shape: f32[32,32], index: 1, kind: input, shape index: {}]   ;;  %s3033_s2 = inlined_call_operand.vmem [shape: f32[32,32], index: 2, kind: input, shape index: {}]   ;;  %s3034_s3 = inlined_call_operand.vmem [shape: f32[32,32], index: 3, kind: input, shape index: {}]   ;;  %s3035_s4 = inlined_call_operand.vmem [shape: f32[1,32], index: 4, kind: input, shape index: {}]   ;;  %s3036_s5 = inlined_call_operand.vmem [shape: f32[1,32], index: 5, kind: input, shape index: {}]   ;;  %s3037_s6 = inlined_call_operand.vmem [shape: f32[1,32], index: 6, kind: input, shape index: {}]   ;;  %s3038_s7 = inlined_call_operand.hbm [shape: f32[32,32], index: 7, kind: input, shape index: {}]   ;;  %s3039_s8 = inlined_call_operand.vmem [shape: f32[1,32], index: 8, kind: input, shape index: {}]   ;;  %s3040_s9 = inlined_call_operand.vmem [shape: f32[1,32], index: 9, kind: input, shape index: {}]   ;;  %s3041_s10 = inlined_call_operand.vmem [shape: f32[1,32], index: 10, kind: input, shape index: {}]   ;;  %s3042_s11 = inlined_call_operand.hbm [shape: f32[32,64], index: 11, kind: input, shape index: {}]   ;;  %s3043_s12 = inlined_call_operand.vmem [shape: f32[1,64], index: 12, kind: input, shape index: {}]   ;;  %s3044_s13 = inlined_call_operand.vmem [shape: f32[64,32], index: 13, kind: input, shape index: {}]   ;;  %s3045_s14 = inlined_call_operand.vmem [shape: f32[1,32], index: 14, kind: input, shape index: {}]   ;;  %s3046_s15 = inlined_call_operand.vmem [shape: f32[1,32], index: 15, kind: input, shape index: {}]   ;;  %s3047_s16 = inlined_call_operand.vmem [shape: f32[1,32], index: 16, kind: input, shape index: {}]   ;;  %s3048_s17 = inlined_call_operand.hbm [shape: f32[16,32], index: 17, kind: output, shape index: {}]  }
   0x1   :  { %3051 = sst [smem:[#allocation12_spill]] %s3031_s0 }
   0x2   :  { %3052 = sst [smem:[#allocation13_spill]] %s3032_s1 }
   0x3   :  { %22 = vsyncpa [#allocation3], 0 }
   0x4   :  { %23 = vsyncpa [#allocation6], 0 }
   0x5   :  { %24 = vsyncpa [#allocation4], 0  ;;  %s2581_s24 = smov [#allocation5]   ;;  %s2582_s26 = smov [#allocation2]  }
   0x6   :  { %s54_s25 = sshll.u32 %s2581_s24, 4  ;;  %s30_s27 = sshll.u32 %s2582_s26, 4  ;;  %s55_s25 = int_to_ptr.vmem [resolvable:$true] %s54_s25  ;;  %s2684_s27 = int_to_ptr.vmem [resolvable:$true] %s30_s27 }
   0x7   :  { %s2487_s0 = scalar_lea.hbm %s3038_s7, 512 }
   0x8   :  { %p2488_p0 = scmp.ne.s32.totalorder %s3038_s7, %s2487_s0  ;;  %p2491_p1 = scmp.lt.u32.totalorder %s2487_s0, %s3038_s7 }
   0xa   :  { %p2493_p2 = pnand %p2491_p1, %p2488_p0 }
   0xc   :  { %2496 = shalt.err (!%p2493_p2)
}
   0xd   :  { %s2497_s20 = scalar_lea.vmem %s55_s25, 512  ;;  %p2502_p4 = scmp.lt.s32.totalorder %s55_s25, %s55_s25 }
   0xe   :  { %p2498_p3 = scmp.ne.s32.totalorder %s55_s25, %s2497_s20  ;;  %p2503_p5 = scmp.lt.s32.totalorder %s2497_s20, %s2497_s20 }
  0x10   :  { %p2504_p6 = por %p2503_p5, %p2502_p4 }
  0x12   :  { %p2505_p7 = pnand %p2504_p6, %p2498_p3 }
  0x14   :  { %2508 = shalt.err (!%p2505_p7)
}
  0x15   :  { %s2583_s21 = smov 128   ;;  %s2584_s22 = smov 8  }
  0x16   :  { %60 = dma.hbm_to_vmem [thread:$0]  %s3038_s7, 512, %s55_s25, [#allocation6], %s2583_s21, %s2583_s21, %s2584_s22  }
  0x17   :  { %s3053_s29 = sld [smem:[#allocation12_spill]] }
  0x1d   :  { %s2509_s0 = scalar_lea.hbm %s3053_s29, 256 }
  0x1e   :  { %p2510_p8 = scmp.ne.s32.totalorder %s3053_s29, %s2509_s0  ;;  %p2513_p9 = scmp.lt.u32.totalorder %s2509_s0, %s3053_s29 }
  0x20   :  { %p2515_p10 = pnand %p2513_p9, %p2510_p8 }
  0x22   :  { %2518 = shalt.err (!%p2515_p10)
}
  0x23   :  { %s2519_s20 = scalar_lea.vmem %s2684_s27, 256  ;;  %p2524_p12 = scmp.lt.s32.totalorder %s2684_s27, %s2684_s27 }
  0x24   :  { %p2520_p11 = scmp.ne.s32.totalorder %s2684_s27, %s2519_s20  ;;  %p2525_p13 = scmp.lt.s32.totalorder %s2519_s20, %s2519_s20 }
  0x26   :  { %p2526_p0 = por %p2525_p13, %p2524_p12 }
  0x28   :  { %p2527_p1 = pnand %p2526_p0, %p2520_p11 }
  0x2a   :  { %2530 = shalt.err (!%p2527_p1)
}
  0x2b   :  { %36 = dma.hbm_to_vmem [thread:$0]  %s3053_s29, 256, %s2684_s27, [#allocation3], %s2583_s21, %s2583_s21, %s2584_s22  }
  0x2c   :  { %s2585_s23 = smov [#allocation7]   ;;  %s2531_s0 = scalar_lea.hbm %s3042_s11, 512 }
  0x2d   :  { %s72_s24 = sshll.u32 %s2585_s23, 4  ;;  %p2532_p2 = scmp.ne.s32.totalorder %s3042_s11, %s2531_s0  ;;  %s73_s24 = int_to_ptr.vmem [resolvable:$true] %s72_s24 }
  0x2e   :  { %p2535_p3 = scmp.lt.u32.totalorder %s2531_s0, %s3042_s11 }
  0x30   :  { %p2537_p4 = pnand %p2535_p3, %p2532_p2 }
  0x32   :  { %2540 = shalt.err (!%p2537_p4)
}
  0x33   :  { %s2541_s20 = scalar_lea.vmem %s73_s24, 512  ;;  %p2546_p6 = scmp.lt.s32.totalorder %s73_s24, %s73_s24 }
  0x34   :  { %p2542_p5 = scmp.ne.s32.totalorder %s73_s24, %s2541_s20  ;;  %p2547_p7 = scmp.lt.s32.totalorder %s2541_s20, %s2541_s20 }
  0x36   :  { %p2548_p8 = por %p2547_p7, %p2546_p6 }
  0x38   :  { %p2549_p9 = pnand %p2548_p8, %p2542_p5 }
  0x3a   :  { %2552 = shalt.err (!%p2549_p9)
}
  0x3b   :  { %78 = dma.hbm_to_vmem [thread:$0]  %s3042_s11, 512, %s73_s24, [#allocation6], %s2583_s21, %s2583_s21, %s2584_s22  }
  0x3c   :  { %2575 = dma.done.wait [#allocation3], 256  }
  0x3d   :  { %2576 = vsyncadd [#allocation3], 4294967040 }
  0x3e   :  { %2577 = dma.done.wait [#allocation6], 1024  }
  0x3f   :  { %2578 = vsyncadd [#allocation6], 4294966272  ;;  %vm111_vm0 = vcmask 261120   ;;  %s3054_s23 = sld [smem:[#allocation13_spill]]  ;;  %v2748_v5 = vld [vmem:[#allocation2] sm:$0xff]  ;;  %v194_v8 = vld [vmem:[%s3033_s2 + $0x8] sm:$0xff] }
  0x40   :  { %2232 = vmatprep.mubr.msk.f32.mxu1 %vm111_vm0, %v2748_v5  ;;  %v193_v7 = vld [vmem:[%s3033_s2] sm:$0xff]  ;;  %2254 = vmatprep.mubr.msk.f32.mxu0 %vm111_vm0, %v2748_v5  ;;  %v195_v10 = vld [vmem:[%s3033_s2 + $0x10] sm:$0xff]  ;;  %v196_v11 = vld [vmem:[%s3033_s2 + $0x18] sm:$0xff]  ;;  %v2586_v14 = vmov 0.0   ;;  %vm2587_vm1 = vmmov 0   ;;  %vm365_vm2 = vcmask 64512  }
  0x41   :  { %v2386_v9 = vpack.c.bf16 %v194_v8, %v193_v7  ;;  %v2766_v12 = vld [vmem:[#allocation2 + $0x8] sm:$0xff]  ;;  %v2390_v13 = vpack.c.bf16 %v196_v11, %v195_v10  ;;  %v2109_v17 = vld [vmem:[%s3036_s5] ss:$0 sm:$0xff]  ;;  %s2588_s0 = smov 120   ;;  %v281_v27 = vld [vmem:[%s3034_s3 + $0x10] sm:$0xff]  ;;  %s2590_s27 = smov 104  }
  0x42   :  { %v2106_v21 = vld [vmem:[%s3035_s4] ss:$0 sm:$0xff]  ;;  %v280_v26 = vld [vmem:[%s3034_s3 + $0x8] sm:$0xff]  ;;  %v282_v29 = vld [vmem:[%s3034_s3 + $0x18] sm:$0xff]  ;;  %s2591_s29 = smov 16   ;;  %s2592_s7 = smov 24  }
  0x43   :  { %v279_v25 = vld [vmem:[%s3034_s3] sm:$0xff]  ;;  %v2398_v30 = vpack.c.bf16 %v282_v29, %v281_v27  ;;  %vm1707_vm3 = vcmask 195584   ;;  %vm1704_vm4 = vcmask 130048   ;;  %vm1958_vm5 = vcmask 523264   ;;  %s2593_s26 = smov [#allocation8]  }
  0x44   :  { %v2394_v28 = vpack.c.bf16 %v280_v26, %v279_v25  ;;  %v2112_v48 = vld [vmem:[%s3037_s6] ss:$0 sm:$0xff]  ;;  %s2589_s6 = smov 112   ;;  %s2093_s28 = sshll.u32 %s2593_s26, 4  ;;  %s2094_s28 = int_to_ptr.vmem [resolvable:$true] %s2093_s28 }
  0x45   :  { %v100_v0 = vld [vmem:[%s3054_s23] sm:$0xff]  ;;  %v101_v1 = vld [vmem:[%s3054_s23 + $0x8] sm:$0xff]  ;;  %v102_v2 = vld [vmem:[%s3054_s23 + $0x10] sm:$0xff]  ;;  %p2558_p11 = scmp.lt.s32.totalorder %s2094_s28, %s2094_s28 }
  0x46   :  { %v2378_v3 = vpack.c.bf16 %v101_v1, %v100_v0  ;;  %v103_v4 = vld [vmem:[%s3054_s23 + $0x18] sm:$0xff]  ;;  %2395 = vmatprep.subr.bf16.mxu0 %v2394_v28 }
  0x47   :  { %v2382_v6 = vpack.c.bf16 %v103_v4, %v102_v2  ;;  %2397 = vmatpush3.bf16.msra.mxu0 %v2394_v28 }
  0x48   :  { %2379 = vmatprep.subr.bf16.mxu1 %v2378_v3  ;;  %2399 = vmatprep.subr.bf16.mxu0 %v2398_v30 }
  0x49   :  { %2381 = vmatpush3.bf16.msra.mxu1 %v2378_v3 }
  0x4a   :  { %2383 = vmatprep.subr.bf16.mxu1 %v2382_v6 }
  0x4b   :  { %2401 = vmatpush3.bf16.msra.mxu0 %v2398_v30 }
  0x4c   :  { %2267 = vmatprep.subr.mxu0 %v2586_v14 }
  0x4d   :  { %2385 = vmatpush3.bf16.msra.mxu1 %v2382_v6 }
  0x4e   :  { %2387 = vmatprep.subr.bf16.mxu1 %v2386_v9  ;;  %2255 = vmatmul.mubr.msk.f32.vlgmr.msra.gmra.mrb[0].mxu0 %vm111_vm0, %v2766_v12 }
  0x4f   :  { %2269 = vmatprep.mubr.msk.f32.mxu0 %vm2587_vm1, %v2586_v14 }
  0x50   :  { %2233 = vmatmul.mubr.msk.f32.vlgmr.msra.gmra.mrb[0].mxu1 %vm111_vm0, %v2766_v12 }
  0x51   :  { %2389 = vmatpush3.bf16.msra.mxu1 %v2386_v9  ;;  %2243 = vmatprep.mubr.msk.f32.mxu1 %vm111_vm0, %v2748_v5 }
  0x52   :  { %2391 = vmatprep.subr.bf16.mxu1 %v2390_v13 }
  0x55   :  { %2393 = vmatpush3.bf16.msra.mxu1 %v2390_v13 }
  0x56   :  { %2257 = vmatprep.subr.mxu1 %v2586_v14 }
  0x58   :  { %2244 = vmatmul.mubr.msk.f32.vlgmr.msra.gmra.mrb[2].mxu1 %vm111_vm0, %v2766_v12 }
  0x59   :  { %2259 = vmatprep.mubr.msk.f32.mxu1 %vm2587_vm1, %v2586_v14 }
 0x121   :  { %v2256_v47 = vpop.f32.mrb[0].mxu0 }
 0x122   :  { %v356_v49 = vpop.f32.mrb[1].mxu0  ;;  %v2835_v50 = vadd.f32 %v2256_v47, %v2112_v48 }
 0x123   :  { %v2234_v15 = vpop.f32.mrb[0].mxu1  ;;  %v2837_v51 = vadd.f32 %v2112_v48, %v356_v49 }
 0x124   :  { %v184_v16 = vpop.f32.mrb[1].mxu1  ;;  %v2802_v24 = vadd.f32 %v2234_v15, %v2106_v21 }
 0x125   :  { %v2791_v23 = vadd.f32 %v2106_v21, %v184_v16  ;;  %2268 = vmatpush3.msra.mxu0 %v2837_v51 }
 0x126   :  { %2277 = vmatprep.subr.mxu0 %v2586_v14 }
 0x12b   :  { %v2245_v18 = vpop.f32.mrb[2].mxu1 }
 0x12c   :  { %v2780_v19 = vadd.f32 %v2245_v18, %v2109_v17  ;;  %v270_v20 = vpop.f32.mrb[3].mxu1 }
 0x12d   :  { %v2785_v22 = vadd.f32 %v2109_v17, %v270_v20 }
 0x12e   :  { %766 = vrot.lane.b32.xlu1 %v2780_v19, %s2588_s0 }
 0x12f   :  { %2258 = vmatpush3.xpose.msk.msra.mxu1 %vm365_vm2, %v2785_v22 }
 0x130   :  { %2262 = vmatprep.subr.mxu1 %v2586_v14 }
 0x132   :  { %686 = vrot.lane.b32.xlu1 %v2791_v23, %s2588_s0  ;;  %2260 = vmatmul.mubr.msk.f32.vlgmr.msra.gmra.mrb[4].mxu1 %vm365_vm2, %v2791_v23 }
 0x133   :  { %2263 = vmatpush3.xpose.msk.msra.mxu1 %vm365_vm2, %v2780_v19  ;;  %2264 = vmatprep.mubr.msk.f32.mxu1 %vm2587_vm1, %v2586_v14 }
 0x134   :  { %2272 = vmatprep.subr.mxu1 %v2586_v14 }
 0x136   :  { %2265 = vmatmul.mubr.msk.f32.vlgmr.msra.gmra.mrb[6].mxu1 %vm365_vm2, %v2802_v24 }
 0x137   :  { %2274 = vmatprep.mubr.msk.f32.mxu1 %vm2587_vm1, %v2586_v14  ;;  %2273 = vmatpush3.msra.mxu1 %v2835_v50 }
 0x138   :  { %2282 = vmatprep.subr.mxu1 %v2586_v14 }
 0x1a0   :  { %v767_v52 = vpop.permute.xlu1 %766 }
 0x1a4   :  { %v687_v53 = vpop.permute.xlu1 %686 }
 0x205   :  { %v438_v31 = vpop.f32.mrb[4].mxu1 }
 0x206   :  { %v2261_v32 = vpop.f32.mrb[5].mxu1  ;;  %v518_v33 = vsel %vm365_vm2, %v438_v31, -inf }
 0x207   :  { %519 = vmax.xlane.f32.xlu0 %v518_v33 }
 0x209   :  { %v514_v34 = vpop.f32.mrb[6].mxu1 }
 0x20a   :  { %v2266_v35 = vpop.f32.mrb[7].mxu1  ;;  %v521_v36 = vsel %vm365_vm2, %v514_v34, -inf }
 0x20b   :  { %522 = vmax.xlane.f32.xlu0 %v521_v36 }
 0x221   :  { %688 = vrot.lane.b32.xlu0 %v2785_v22, %s2588_s0 }
 0x294   :  { %v520_v37 = vpop.xlane.xlu0 %519 }
 0x295   :  { %v524_v38 = vsub.f32 %v438_v31, %v520_v37 }
 0x297   :  { %v526_v39 = vmul.f32 1.442695, %v524_v38 }
 0x298   :  { %v523_v40 = vpop.xlane.xlu0 %522 }
 0x299   :  { %2447 = vpow2.f32 %v526_v39  ;;  %v525_v41 = vsub.f32 %v514_v34, %v523_v40 }
 0x29b   :  { %v528_v42 = vmul.f32 1.442695, %v525_v41 }
 0x29c   :  { %v689_v58 = vpop.permute.xlu0 %688 }
 0x29d   :  { %2449 = vpow2.f32 %v528_v42 }
 0x2a3   :  { %v2448_v43 = vpop.eup %2447 }
 0x2a4   :  { %v530_v44 = vsel %vm365_vm2, %v2448_v43, 0.0 }
 0x2a5   :  { %531 = vadd.xlane.f32.xlu1 %v530_v44 }
 0x2a7   :  { %v2450_v45 = vpop.eup %2449 }
 0x2a8   :  { %v533_v46 = vsel %vm365_vm2, %v2450_v45, 0.0 }
 0x2a9   :  { %534 = vadd.xlane.f32.xlu1 %v533_v46 }
 0x2ba   :  { %764 = vrot.lane.b32.xlu1 %v2802_v24, %s2588_s0 }
 0x332   :  { %v532_v54 = vpop.xlane.xlu1 %531 }
 0x333   :  { %2451 = vrcp.f32 %v532_v54 }
 0x336   :  { %v535_v55 = vpop.xlane.xlu1 %534 }
 0x337   :  { %2453 = vrcp.f32 %v535_v55 }
 0x33a   :  { %v765_v61 = vpop.permute.xlu1 %764 }
 0x33d   :  { %v2452_v56 = vpop.eup %2451 }
 0x33e   :  { %v538_v57 = vmul.f32 %v2452_v56, %v2448_v43 }
 0x340   :  { %2270 = vmatmul.mubr.msk.f32.vlgmr.msra.gmra.mrb[2].mxu0 %vm365_vm2, %v538_v57 }
 0x341   :  { %v2454_v59 = vpop.eup %2453  ;;  %2278 = vmatpush3.xpose.msk.msra.mxu0 %vm365_vm2, %v689_v58  ;;  %2279 = vmatprep.mubr.msk.f32.mxu0 %vm2587_vm1, %v2586_v14 }
 0x342   :  { %v539_v60 = vmul.f32 %v2454_v59, %v2450_v45  ;;  %2287 = vmatprep.subr.mxu0 %v2586_v14 }
 0x344   :  { %2275 = vmatmul.mubr.msk.f32.vlgmr.msra.gmra.mrb[8].mxu1 %vm365_vm2, %v539_v60  ;;  %2280 = vmatmul.mubr.msk.f32.vlgmr.msra.gmra.mrb[4].mxu0 %vm365_vm2, %v687_v53 }
 0x345   :  { %2283 = vmatpush3.xpose.msk.msra.mxu1 %vm365_vm2, %v767_v52  ;;  %2284 = vmatprep.mubr.msk.f32.mxu1 %vm2587_vm1, %v2586_v14 }
 0x346   :  { %2292 = vmatprep.subr.mxu1 %v2586_v14  ;;  %2289 = vmatprep.mubr.msk.f32.mxu0 %vm2587_vm1, %v2586_v14 }
 0x348   :  { %2285 = vmatmul.mubr.msk.f32.vlgmr.msra.gmra.mrb[10].mxu1 %vm365_vm2, %v765_v61 }
 0x349   :  { %2294 = vmatprep.mubr.msk.f32.mxu1 %vm2587_vm1, %v2586_v14 }
 0x413   :  { %v2861_v62 = vpop.f32.mrb[2].mxu0 }
 0x414   :  { %v2271_v63 = vpop.f32.mrb[3].mxu0 }
 0x417   :  { %v2863_v0 = vpop.f32.mrb[8].mxu1  ;;  %v760_v1 = vpop.f32.mrb[4].mxu0 }
 0x418   :  { %v2276_v2 = vpop.f32.mrb[9].mxu1  ;;  %v2281_v3 = vpop.f32.mrb[5].mxu0  ;;  %v842_v4 = vsel %vm365_vm2, %v760_v1, -inf }
 0x419   :  { %843 = vmax.xlane.f32.xlu0 %v842_v4 }
 0x41b   :  { %v838_v6 = vpop.f32.mrb[10].mxu1 }
 0x41c   :  { %v2286_v7 = vpop.f32.mrb[11].mxu1  ;;  %v845_v8 = vsel %vm365_vm2, %v838_v6, -inf }
 0x41d   :  { %846 = vmax.xlane.f32.xlu1 %v845_v8 }
 0x42e   :  { %942 = vrot.lane.b32.xlu1 %v2835_v50, %s2588_s0 }
 0x42f   :  { %865 = vrot.lane.b32.xlu0 %v2837_v51, %s2588_s0  ;;  %s2553_s0 = scalar_lea.vmem %s2094_s28, 256 }
 0x430   :  { %p2554_p10 = scmp.ne.s32.totalorder %s2094_s28, %s2553_s0  ;;  %p2559_p12 = scmp.lt.s32.totalorder %s2553_s0, %s2553_s0 }
 0x432   :  { %1020 = vrot.lane.b32.xlu1 %v2785_v22, %s2589_s6  ;;  %p2560_p13 = por %p2559_p12, %p2558_p11 }
 0x434   :  { %p2561_p0 = pnand %p2560_p13, %p2554_p10 }
 0x436   :  { %1098 = vrot.lane.b32.xlu1 %v2780_v19, %s2589_s6 }
 0x43a   :  { %1096 = vrot.lane.b32.xlu1 %v2802_v24, %s2589_s6 }
 0x4a6   :  { %v844_v9 = vpop.xlane.xlu0 %843 }
 0x4a7   :  { %v848_v10 = vsub.f32 %v760_v1, %v844_v9 }
 0x4a9   :  { %v850_v11 = vmul.f32 1.442695, %v848_v10 }
 0x4aa   :  { %v866_v13 = vpop.permute.xlu0 %865  ;;  %v847_v15 = vpop.xlane.xlu1 %846 }
 0x4ab   :  { %2455 = vpow2.f32 %v850_v11  ;;  %v849_v16 = vsub.f32 %v838_v6, %v847_v15  ;;  %2288 = vmatpush3.msra.mxu0 %v866_v13 }
 0x4ac   :  { %2297 = vmatprep.subr.mxu0 %v2586_v14 }
 0x4ad   :  { %v852_v17 = vmul.f32 1.442695, %v849_v16 }
 0x4ae   :  { %v943_v18 = vpop.permute.xlu1 %942 }
 0x4af   :  { %2457 = vpow2.f32 %v852_v17  ;;  %2293 = vmatpush3.msra.mxu1 %v943_v18 }
 0x4b0   :  { %2302 = vmatprep.subr.mxu1 %v2586_v14 }
 0x4b2   :  { %v1021_v29 = vpop.permute.xlu1 %1020 }
 0x4b5   :  { %v2456_v20 = vpop.eup %2455 }
 0x4b6   :  { %v854_v21 = vsel %vm365_vm2, %v2456_v20, 0.0  ;;  %v1099_v33 = vpop.permute.xlu1 %1098 }
 0x4b7   :  { %855 = vadd.xlane.f32.xlu0 %v854_v21 }
 0x4b9   :  { %v2458_v25 = vpop.eup %2457 }
 0x4ba   :  { %v857_v26 = vsel %vm365_vm2, %v2458_v25, 0.0  ;;  %v1097_v36 = vpop.permute.xlu1 %1096 }
 0x4bb   :  { %858 = vadd.xlane.f32.xlu0 %v857_v26 }
 0x4d1   :  { %1018 = vrot.lane.b32.xlu0 %v2791_v23, %s2589_s6 }
 0x544   :  { %v856_v27 = vpop.xlane.xlu0 %855 }
 0x545   :  { %2459 = vrcp.f32 %v856_v27 }
 0x548   :  { %v859_v28 = vpop.xlane.xlu0 %858 }
 0x549   :  { %2461 = vrcp.f32 %v859_v28 }
 0x54c   :  { %v1019_v35 = vpop.permute.xlu0 %1018 }
 0x54f   :  { %v2460_v30 = vpop.eup %2459 }
 0x550   :  { %v862_v31 = vmul.f32 %v2460_v30, %v2456_v20 }
 0x552   :  { %2290 = vmatmul.mubr.msk.f32.vlgmr.msra.gmra.mrb[6].mxu0 %vm365_vm2, %v862_v31 }
 0x553   :  { %v2462_v32 = vpop.eup %2461  ;;  %2298 = vmatpush3.xpose.msk.msra.mxu0 %vm365_vm2, %v1021_v29  ;;  %2299 = vmatprep.mubr.msk.f32.mxu0 %vm2587_vm1, %v2586_v14 }
 0x554   :  { %v863_v34 = vmul.f32 %v2462_v32, %v2458_v25  ;;  %2307 = vmatprep.subr.mxu0 %v2586_v14 }
 0x556   :  { %2295 = vmatmul.mubr.msk.f32.vlgmr.msra.gmra.mrb[12].mxu1 %vm365_vm2, %v863_v34  ;;  %2300 = vmatmul.mubr.msk.f32.vlgmr.msra.gmra.mrb[8].mxu0 %vm365_vm2, %v1019_v35 }
 0x557   :  { %2303 = vmatpush3.xpose.msk.msra.mxu1 %vm365_vm2, %v1099_v33  ;;  %2304 = vmatprep.mubr.msk.f32.mxu1 %vm2587_vm1, %v2586_v14 }
 0x558   :  { %2312 = vmatprep.subr.mxu1 %v2586_v14  ;;  %2309 = vmatprep.mubr.msk.f32.mxu0 %vm2587_vm1, %v2586_v14 }
 0x55a   :  { %2305 = vmatmul.mubr.msk.f32.vlgmr.msra.gmra.mrb[14].mxu1 %vm365_vm2, %v1097_v36 }
 0x55b   :  { %2314 = vmatprep.mubr.msk.f32.mxu1 %vm2587_vm1, %v2586_v14 }
 0x625   :  { %v2899_v37 = vpop.f32.mrb[6].mxu0 }
 0x626   :  { %v2291_v38 = vpop.f32.mrb[7].mxu0 }
 0x627   :  { %v1710_v38 = vld [vmem:[#allocation5] sm:$0xff] }
 0x629   :  { %v2901_v39 = vpop.f32.mrb[12].mxu1  ;;  %v1092_v40 = vpop.f32.mrb[8].mxu0 }
 0x62a   :  { %v2296_v41 = vpop.f32.mrb[13].mxu1  ;;  %v2301_v42 = vpop.f32.mrb[9].mxu0  ;;  %v1174_v43 = vsel %vm365_vm2, %v1092_v40, -inf }
 0x62b   :  { %1175 = vmax.xlane.f32.xlu0 %v1174_v43  ;;  %v1713_v41 = vld [vmem:[#allocation5 + $0x18] sm:$0xff] }
 0x62d   :  { %v1170_v44 = vpop.f32.mrb[14].mxu1 }
 0x62e   :  { %v2306_v45 = vpop.f32.mrb[15].mxu1  ;;  %v1177_v46 = vsel %vm365_vm2, %v1170_v44, -inf }
 0x62f   :  { %1178 = vmax.xlane.f32.xlu1 %v1177_v46 }
 0x640   :  { %1272 = vrot.lane.b32.xlu1 %v2835_v50, %s2589_s6 }
 0x641   :  { %1196 = vrot.lane.b32.xlu0 %v2837_v51, %s2589_s6 }
 0x644   :  { %1350 = vrot.lane.b32.xlu1 %v2785_v22, %s2590_s27 }
 0x648   :  { %1428 = vrot.lane.b32.xlu1 %v2780_v19, %s2590_s27 }
 0x64c   :  { %1426 = vrot.lane.b32.xlu1 %v2802_v24, %s2590_s27 }
 0x6b8   :  { %v1176_v47 = vpop.xlane.xlu0 %1175 }
 0x6b9   :  { %v1180_v48 = vsub.f32 %v1092_v40, %v1176_v47 }
 0x6bb   :  { %v1182_v49 = vmul.f32 1.442695, %v1180_v48 }
 0x6bc   :  { %v1197_v52 = vpop.permute.xlu0 %1196  ;;  %v1179_v53 = vpop.xlane.xlu1 %1178 }
 0x6bd   :  { %2463 = vpow2.f32 %v1182_v49  ;;  %v1181_v54 = vsub.f32 %v1170_v44, %v1179_v53  ;;  %2308 = vmatpush3.msra.mxu0 %v1197_v52 }
 0x6be   :  { %2317 = vmatprep.subr.mxu0 %v2586_v14 }
 0x6bf   :  { %v1184_v55 = vmul.f32 1.442695, %v1181_v54 }
 0x6c0   :  { %v1273_v56 = vpop.permute.xlu1 %1272 }
 0x6c1   :  { %2465 = vpow2.f32 %v1184_v55  ;;  %2313 = vmatpush3.msra.mxu1 %v1273_v56 }
 0x6c2   :  { %2322 = vmatprep.subr.mxu1 %v2586_v14 }
 0x6c4   :  { %v1351_v60 = vpop.permute.xlu1 %1350 }
 0x6c7   :  { %v2464_v19 = vpop.eup %2463 }
 0x6c8   :  { %v1186_v22 = vsel %vm365_vm2, %v2464_v19, 0.0  ;;  %v1429_v2 = vpop.permute.xlu1 %1428 }
 0x6c9   :  { %1187 = vadd.xlane.f32.xlu0 %v1186_v22 }
 0x6cb   :  { %v2466_v24 = vpop.eup %2465 }
 0x6cc   :  { %v1189_v57 = vsel %vm365_vm2, %v2466_v24, 0.0  ;;  %v1427_v4 = vpop.permute.xlu1 %1426 }
 0x6cd   :  { %1190 = vadd.xlane.f32.xlu0 %v1189_v57 }
 0x6e3   :  { %1348 = vrot.lane.b32.xlu0 %v2791_v23, %s2590_s27 }
 0x756   :  { %v1188_v58 = vpop.xlane.xlu0 %1187 }
 0x757   :  { %2467 = vrcp.f32 %v1188_v58  ;;  %v2139_v58 = vld [vmem:[%s3039_s8] ss:$0 sm:$0xff] }
 0x75a   :  { %v1191_v59 = vpop.xlane.xlu0 %1190 }
 0x75b   :  { %2469 = vrcp.f32 %v1191_v59 }
 0x75e   :  { %v1349_v23 = vpop.permute.xlu0 %1348 }
 0x761   :  { %v2468_v61 = vpop.eup %2467 }
 0x762   :  { %v1194_v63 = vmul.f32 %v2468_v61, %v2464_v19 }
 0x764   :  { %2310 = vmatmul.mubr.msk.f32.vlgmr.msra.gmra.mrb[10].mxu0 %vm365_vm2, %v1194_v63 }
 0x765   :  { %v2470_v1 = vpop.eup %2469  ;;  %2318 = vmatpush3.xpose.msk.msra.mxu0 %vm365_vm2, %v1351_v60  ;;  %2319 = vmatprep.mubr.msk.f32.mxu0 %vm2587_vm1, %v2586_v14 }
 0x766   :  { %v1195_v3 = vmul.f32 %v2470_v1, %v2466_v24  ;;  %2327 = vmatprep.subr.mxu0 %v2586_v14 }
 0x768   :  { %2315 = vmatmul.mubr.msk.f32.vlgmr.msra.gmra.mrb[16].mxu1 %vm365_vm2, %v1195_v3  ;;  %2320 = vmatmul.mubr.msk.f32.vlgmr.msra.gmra.mrb[12].mxu0 %vm365_vm2, %v1349_v23 }
 0x769   :  { %2323 = vmatpush3.xpose.msk.msra.mxu1 %vm365_vm2, %v1429_v2  ;;  %2324 = vmatprep.mubr.msk.f32.mxu1 %vm2587_vm1, %v2586_v14 }
 0x76a   :  { %2332 = vmatprep.subr.mxu1 %v2586_v14  ;;  %2329 = vmatprep.mubr.msk.f32.mxu0 %vm2587_vm1, %v2586_v14 }
 0x76c   :  { %2325 = vmatmul.mubr.msk.f32.vlgmr.msra.gmra.mrb[18].mxu1 %vm365_vm2, %v1427_v4 }
 0x76d   :  { %2334 = vmatprep.mubr.msk.f32.mxu1 %vm2587_vm1, %v2586_v14 }
 0x837   :  { %v1268_v6 = vpop.f32.mrb[10].mxu0 }
 0x838   :  { %v2311_v7 = vpop.f32.mrb[11].mxu0 }
 0x83b   :  { %v1344_v8 = vpop.f32.mrb[16].mxu1  ;;  %v1422_v9 = vpop.f32.mrb[12].mxu0 }
 0x83c   :  { %v2316_v10 = vpop.f32.mrb[17].mxu1  ;;  %v2321_v11 = vpop.f32.mrb[13].mxu0  ;;  %v1504_v13 = vsel %vm365_vm2, %v1422_v9, -inf }
 0x83d   :  { %1505 = vmax.xlane.f32.xlu0 %v1504_v13  ;;  %v1850_v13 = vld [vmem:[#allocation7 + $0x8] sm:$0xff] }
 0x83f   :  { %v1500_v15 = vpop.f32.mrb[18].mxu1 }
 0x840   :  { %v2326_v16 = vpop.f32.mrb[19].mxu1  ;;  %v1507_v17 = vsel %vm365_vm2, %v1500_v15, -inf }
 0x841   :  { %1508 = vmax.xlane.f32.xlu1 %v1507_v17  ;;  %v1851_v16 = vld [vmem:[#allocation7 + $0x10] sm:$0xff]  ;;  %v1852_v17 = vld [vmem:[#allocation7 + $0x18] sm:$0xff] }
 0x852   :  { %1602 = vrot.lane.b32.xlu1 %v2835_v50, %s2590_s27 }
 0x856   :  { %1680 = vrot.lane.b32.xlu1 %v2899_v37, %s2584_s22 }
 0x85a   :  { %1682 = vrot.lane.b32.xlu1 %v2901_v39, %s2584_s22  ;;  %v1711_v39 = vld [vmem:[#allocation5 + $0x8] sm:$0xff] }
 0x85b   :  { %v2402_v40 = vpack.c.bf16 %v1711_v39, %v1710_v38  ;;  %v2143_v39 = vld [vmem:[%s3041_s10] ss:$0 sm:$0xff] }
 0x85e   :  { %1690 = vrot.lane.b32.xlu1 %v1344_v8, %s2591_s29 }
 0x8ca   :  { %v1506_v14 = vpop.xlane.xlu0 %1505 }
 0x8cb   :  { %v1510_v18 = vsub.f32 %v1422_v9, %v1506_v14  ;;  %v2414_v14 = vpack.c.bf16 %v1852_v17, %v1851_v16  ;;  %v2150_v16 = vld [vmem:[%s3046_s15] ss:$0 sm:$0xff] }
 0x8cd   :  { %v1512_v20 = vmul.f32 1.442695, %v1510_v18  ;;  %v1943_v18 = vld [vmem:[%s3044_s13] sm:$0xff] }
 0x8ce   :  { %v1509_v21 = vpop.xlane.xlu1 %1508 }
 0x8cf   :  { %2471 = vpow2.f32 %v1512_v20  ;;  %v1511_v25 = vsub.f32 %v1500_v15, %v1509_v21  ;;  %v1944_v20 = vld [vmem:[%s3044_s13 + $0x8] sm:$0xff]  ;;  %v1945_v21 = vld [vmem:[%s3044_s13 + $0x10] sm:$0xff] }
 0x8d1   :  { %v1514_v26 = vmul.f32 1.442695, %v1511_v25  ;;  %v2418_v25 = vpack.c.bf16 %v1944_v20, %v1943_v18  ;;  %v2151_v20 = vld [vmem:[%s3047_s16] ss:$0 sm:$0xff] }
 0x8d2   :  { %v1603_v27 = vpop.permute.xlu1 %1602 }
 0x8d3   :  { %2473 = vpow2.f32 %v1514_v26  ;;  %2333 = vmatpush3.msra.mxu1 %v1603_v27  ;;  %v1946_v26 = vld [vmem:[%s3044_s13 + $0x18] sm:$0xff] }
 0x8d4   :  { %v2422_v27 = vpack.c.bf16 %v1946_v26, %v1945_v21 }
 0x8d6   :  { %v1681_v47 = vpop.permute.xlu1 %1680 }
 0x8d7   :  { %v1702_v52 = vsel %vm365_vm2, %v2861_v62, %v1681_v47 }
 0x8d9   :  { %v2472_v28 = vpop.eup %2471 }
 0x8da   :  { %v1516_v50 = vsel %vm365_vm2, %v2472_v28, 0.0  ;;  %v1683_v48 = vpop.permute.xlu1 %1682 }
 0x8db   :  { %1517 = vadd.xlane.f32.xlu0 %v1516_v50  ;;  %v1703_v19 = vsel %vm365_vm2, %v2863_v0, %v1683_v48  ;;  %v1948_v50 = vld [vmem:[%s3044_s13 + $0x28] sm:$0xff]  ;;  %v2144_v48 = vld [vmem:[%s3043_s12] ss:$0 sm:$0xff] }
 0x8dd   :  { %v2474_v29 = vpop.eup %2473 }
 0x8de   :  { %v1519_v30 = vsel %vm365_vm2, %v2474_v29, 0.0  ;;  %v1691_v53 = vpop.permute.xlu1 %1690 }
 0x8df   :  { %1520 = vadd.xlane.f32.xlu0 %v1519_v30  ;;  %v1706_v22 = vsel %vm1704_vm4, %v1703_v19, %v1691_v53  ;;  %v2147_v19 = vld [vmem:[%s3045_s14] ss:$0 sm:$0xff] }
 0x8f5   :  { %1526 = vrot.lane.b32.xlu0 %v2837_v51, %s2590_s27  ;;  %v1712_v51 = vld [vmem:[#allocation5 + $0x10] sm:$0xff] }
 0x8f6   :  { %v2406_v42 = vpack.c.bf16 %v1713_v41, %v1712_v51 }
 0x8f9   :  { %1688 = vrot.lane.b32.xlu0 %v1268_v6, %s2591_s29 }
 0x968   :  { %v1518_v31 = vpop.xlane.xlu0 %1517 }
 0x969   :  { %2475 = vrcp.f32 %v1518_v31 }
 0x96c   :  { %v1521_v32 = vpop.xlane.xlu0 %1520 }
 0x96d   :  { %2477 = vrcp.f32 %v1521_v32 }
 0x970   :  { %v1527_v33 = vpop.permute.xlu0 %1526 }
 0x971   :  { %2328 = vmatpush3.msra.mxu0 %v1527_v33 }
 0x972   :  { %2403 = vmatprep.subr.bf16.mxu0 %v2402_v40 }
 0x973   :  { %v2476_v34 = vpop.eup %2475 }
 0x974   :  { %v1524_v35 = vmul.f32 %v2476_v34, %v2472_v28  ;;  %v1689_v49 = vpop.permute.xlu0 %1688  ;;  %v1947_v28 = vld [vmem:[%s3044_s13 + $0x20] sm:$0xff] }
 0x975   :  { %v1705_v54 = vsel %vm1704_vm4, %v1702_v52, %v1689_v49 }
 0x976   :  { %2330 = vmatmul.mubr.msk.f32.vlgmr.msra.gmra.mrb[14].mxu0 %vm365_vm2, %v1524_v35 }
 0x977   :  { %v2478_v36 = vpop.eup %2477  ;;  %2405 = vmatpush3.bf16.msra.mxu0 %v2402_v40 }
 0x978   :  { %v1525_v37 = vmul.f32 %v2478_v36, %v2474_v29  ;;  %2407 = vmatprep.subr.bf16.mxu0 %v2406_v42  ;;  %v2426_v29 = vpack.c.bf16 %v1948_v50, %v1947_v28 }
 0x97a   :  { %2335 = vmatmul.mubr.msk.f32.vlgmr.msra.gmra.mrb[20].mxu1 %vm365_vm2, %v1525_v37  ;;  %v2142_v37 = vld [vmem:[%s3040_s9] ss:$0 sm:$0xff] }
 0x97b   :  { %2409 = vmatpush3.bf16.msra.mxu0 %v2406_v42 }
 0x97c   :  { %2419 = vmatprep.subr.bf16.mxu0 %v2418_v25 }
 0xa49   :  { %v1598_v43 = vpop.f32.mrb[14].mxu0 }
 0xa4a   :  { %1696 = vrot.lane.b32.xlu0 %v1598_v43, %s2592_s7  ;;  %v2331_v44 = vpop.f32.mrb[15].mxu0 }
 0xa4d   :  { %v1674_v45 = vpop.f32.mrb[20].mxu1 }
 0xa4e   :  { %1698 = vrot.lane.b32.xlu1 %v1674_v45, %s2592_s7  ;;  %v2336_v46 = vpop.f32.mrb[21].mxu1  ;;  %v1949_v45 = vld [vmem:[%s3044_s13 + $0x30] sm:$0xff] }
 0xa4f   :  { %v1950_v46 = vld [vmem:[%s3044_s13 + $0x38] sm:$0xff] }
 0xa50   :  { %v2430_v47 = vpack.c.bf16 %v1950_v46, %v1949_v45 }
 0xabc   :  { %v1697_v55 = vpop.permute.xlu0 %1696 }
 0xabd   :  { %v1708_v56 = vsel %vm1707_vm3, %v1705_v54, %v1697_v55 }
 0xabe   :  { %2345 = vmatprep.mubr.msk.f32.mxu0 %vm111_vm0, %v1708_v56 }
 0xac0   :  { %v1699_v24 = vpop.permute.xlu1 %1698 }
 0xac1   :  { %v1709_v57 = vsel %vm1707_vm3, %v1706_v22, %v1699_v24 }
 0xac2   :  { %2346 = vmatmul.mubr.msk.f32.vlgmr.msra.gmra.mrb[16].mxu0 %vm111_vm0, %v1709_v57 }
 0xac3   :  { %2421 = vmatpush3.bf16.msra.mxu0 %v2418_v25 }
 0xac4   :  { %2423 = vmatprep.subr.bf16.mxu0 %v2422_v27 }
 0xac7   :  { %2425 = vmatpush3.bf16.msra.mxu0 %v2422_v27 }
 0xac8   :  { %2427 = vmatprep.subr.bf16.mxu0 %v2426_v29 }
 0xacb   :  { %2429 = vmatpush3.bf16.msra.mxu0 %v2426_v29 }
 0xacc   :  { %2431 = vmatprep.subr.bf16.mxu0 %v2430_v47 }
 0xacf   :  { %2433 = vmatpush3.bf16.msra.mxu0 %v2430_v47 }
 0xb95   :  { %v2347_v62 = vpop.f32.mrb[16].mxu0 }
 0xb96   :  { %v1799_v59 = vadd.f32 %v2347_v62, %v2139_v58  ;;  %v1793_v60 = vpop.f32.mrb[17].mxu0 }
 0xb97   :  { %v1794_v61 = vadd.f32 %v2139_v58, %v1793_v60 }
 0xb98   :  { %v1803_v63 = vadd.f32 %v1799_v59, %v2766_v12 }
 0xb99   :  { %v1802_v1 = vadd.f32 %v1794_v61, %v2748_v5  ;;  %v1849_v5 = vld [vmem:[#allocation7] sm:$0xff] }
 0xb9a   :  { %v1807_v2 = vsel %vm111_vm0, %v1803_v63, 0.0  ;;  %v2410_v15 = vpack.c.bf16 %v1850_v13, %v1849_v5 }
 0xb9b   :  { %1808 = vadd.xlane.f32.xlu1 %v1807_v2  ;;  %v1804_v0 = vsel %vm111_vm0, %v1802_v1, 0.0 }
 0xb9c   :  { %1805 = vadd.xlane.f32.xlu0 %v1804_v0  ;;  %2411 = vmatprep.subr.bf16.mxu1 %v2410_v15 }
 0xb9d   :  { %2413 = vmatpush3.bf16.msra.mxu1 %v2410_v15 }
 0xb9e   :  { %2415 = vmatprep.subr.bf16.mxu1 %v2414_v14 }
 0xba1   :  { %2417 = vmatpush3.bf16.msra.mxu1 %v2414_v14 }
 0xc28   :  { %v1809_v3 = vpop.xlane.xlu1 %1808 }
 0xc29   :  { %v1812_v23 = vmul.f32 0.03125, %v1809_v3  ;;  %v1806_v4 = vpop.xlane.xlu0 %1805 }
 0xc2a   :  { %v1811_v6 = vmul.f32 0.03125, %v1806_v4 }
 0xc2b   :  { %v1814_v7 = vsub.f32 %v1803_v63, %v1812_v23 }
 0xc2c   :  { %v1813_v8 = vsub.f32 %v1802_v1, %v1811_v6 }
 0xc2d   :  { %v1816_v11 = vmul.f32 %v1814_v7, %v1814_v7 }
 0xc2e   :  { %v1815_v9 = vmul.f32 %v1813_v8, %v1813_v8 }
 0xc2f   :  { %v1820_v12 = vsel %vm111_vm0, %v1816_v11, 0.0 }
 0xc30   :  { %v1817_v10 = vsel %vm111_vm0, %v1815_v9, 0.0 }
 0xc31   :  { %1818 = vadd.xlane.f32.xlu0 %v1817_v10 }
 0xc35   :  { %1821 = vadd.xlane.f32.xlu0 %v1820_v12 }
 0xcbe   :  { %v1819_v30 = vpop.xlane.xlu0 %1818 }
 0xcbf   :  { %v1823_v31 = vmul.f32 0.03125, %v1819_v30 }
 0xcc1   :  { %v1825_v32 = vadd.f32 1e-05, %v1823_v31 }
 0xcc2   :  { %v1822_v33 = vpop.xlane.xlu0 %1821 }
 0xcc3   :  { %2479 = vrsqrt.f32 %v1825_v32  ;;  %v1824_v34 = vmul.f32 0.03125, %v1822_v33 }
 0xcc5   :  { %v1826_v35 = vadd.f32 1e-05, %v1824_v34 }
 0xcc7   :  { %2481 = vrsqrt.f32 %v1826_v35 }
 0xccd   :  { %v2480_v36 = vpop.eup %2479 }
 0xcce   :  { %v1829_v38 = vmul.f32 %v2480_v36, %v1813_v8 }
 0xcd0   :  { %v1838_v40 = vmul.f32 %v2142_v37, %v1829_v38 }
 0xcd1   :  { %v2482_v51 = vpop.eup %2481 }
 0xcd2   :  { %v1830_v41 = vmul.f32 %v2482_v51, %v1814_v7  ;;  %v1847_v42 = vadd.f32 %v2143_v39, %v1838_v40 }
 0xcd4   :  { %v1839_v43 = vmul.f32 %v2142_v37, %v1830_v41  ;;  %2356 = vmatprep.mubr.msk.f32.mxu1 %vm111_vm0, %v1847_v42 }
 0xcd6   :  { %v1848_v44 = vadd.f32 %v2143_v39, %v1839_v43 }
 0xcd8   :  { %2357 = vmatmul.mubr.msk.f32.vlgmr.msra.gmra.mrb[22].mxu1 %vm111_vm0, %v1848_v44 }
 0xdab   :  { %v2358_v49 = vpop.f32.mrb[22].mxu1 }
 0xdac   :  { %v1938_v52 = vadd.f32 %v2358_v49, %v2144_v48  ;;  %v1932_v53 = vpop.f32.mrb[23].mxu1 }
 0xdad   :  { %v1933_v54 = vadd.f32 %v2144_v48, %v1932_v53 }
 0xdae   :  { %v1942_v56 = vmax.f32 %v1938_v52, 0.0 }
 0xdaf   :  { %v1941_v55 = vmax.f32 %v1933_v54, 0.0 }
 0xdb1   :  { %2375 = vmatprep.mubr.msk.f32.mxu0 %vm1958_vm5, %v1941_v55 }
 0xdb2   :  { %2376 = vmatmul.mubr.msk.f32.vlgmr.msra.gmra.mrb[18].mxu0 %vm1958_vm5, %v1942_v56 }
 0xe85   :  { %v2377_v22 = vpop.f32.mrb[18].mxu0 }
 0xe86   :  { %v2037_v24 = vadd.f32 %v2377_v22, %v2147_v19  ;;  %v2031_v57 = vpop.f32.mrb[19].mxu0 }
 0xe87   :  { %v2032_v58 = vadd.f32 %v2147_v19, %v2031_v57 }
 0xe88   :  { %v2041_v62 = vadd.f32 %v2037_v24, %v1848_v44 }
 0xe89   :  { %v2040_v59 = vadd.f32 %v2032_v58, %v1847_v42 }
 0xe8a   :  { %v2045_v60 = vsel %vm111_vm0, %v2041_v62, 0.0 }
 0xe8b   :  { %2046 = vadd.xlane.f32.xlu1 %v2045_v60  ;;  %v2042_v61 = vsel %vm111_vm0, %v2040_v59, 0.0 }
 0xe8c   :  { %2043 = vadd.xlane.f32.xlu0 %v2042_v61 }
 0xf18   :  { %v2047_v63 = vpop.xlane.xlu1 %2046 }
 0xf19   :  { %v2049_v1 = vmul.f32 0.03125, %v2047_v63  ;;  %v2044_v2 = vpop.xlane.xlu0 %2043 }
 0xf1a   :  { %v2048_v0 = vmul.f32 0.03125, %v2044_v2 }
 0xf1b   :  { %v2051_v3 = vsub.f32 %v2041_v62, %v2049_v1 }
 0xf1c   :  { %v2050_v23 = vsub.f32 %v2040_v59, %v2048_v0 }
 0xf1d   :  { %v2053_v4 = vmul.f32 %v2051_v3, %v2051_v3 }
 0xf1e   :  { %v2052_v6 = vmul.f32 %v2050_v23, %v2050_v23 }
 0xf1f   :  { %v2057_v7 = vsel %vm111_vm0, %v2053_v4, 0.0 }
 0xf20   :  { %2058 = vadd.xlane.f32.xlu1 %v2057_v7  ;;  %v2054_v8 = vsel %vm111_vm0, %v2052_v6, 0.0 }
 0xf21   :  { %2055 = vadd.xlane.f32.xlu0 %v2054_v8 }
 0xfad   :  { %v2059_v9 = vpop.xlane.xlu1 %2058 }
 0xfae   :  { %v2061_v10 = vmul.f32 0.03125, %v2059_v9  ;;  %v2056_v11 = vpop.xlane.xlu0 %2055 }
 0xfaf   :  { %v2060_v12 = vmul.f32 0.03125, %v2056_v11 }
 0xfb0   :  { %v2063_v5 = vadd.f32 1e-05, %v2061_v10 }
 0xfb1   :  { %v2062_v13 = vadd.f32 1e-05, %v2060_v12 }
 0xfb2   :  { %2483 = vrsqrt.f32 %v2063_v5 }
 0xfb3   :  { %2485 = vrsqrt.f32 %v2062_v13 }
 0xfbc   :  { %v2484_v15 = vpop.eup %2483 }
 0xfbd   :  { %v2486_v17 = vpop.eup %2485  ;;  %v2067_v14 = vmul.f32 %v2484_v15, %v2051_v3 }
 0xfbe   :  { %v2066_v18 = vmul.f32 %v2486_v17, %v2050_v23 }
 0xfbf   :  { %v2076_v21 = vmul.f32 %v2150_v16, %v2067_v14 }
 0xfc0   :  { %v2075_v25 = vmul.f32 %v2150_v16, %v2066_v18 }
 0xfc1   :  { %v2085_v26 = vadd.f32 %v2151_v20, %v2076_v21 }
 0xfc2   :  { %v2084_v27 = vadd.f32 %v2151_v20, %v2075_v25 }
 0xfc3   :  { %2087 = vst.msk [vmem:[#allocation8 + $0x8] sm:$0xff] %vm111_vm0, %v2085_v26 }
 0xfc4   :  { %2086 = vst.msk [vmem:[#allocation8] sm:$0xff] %vm111_vm0, %v2084_v27 }
 0xfc5   :  { %2564 = shalt.err (!%p2561_p0)
}
 0xfc6   :  { %s2565_s4 = scalar_lea.hbm %s3048_s17, 256 }
 0xfc7   :  { %p2566_p1 = scmp.ne.s32.totalorder %s3048_s17, %s2565_s4  ;;  %p2569_p2 = scmp.lt.u32.totalorder %s2565_s4, %s3048_s17 }
 0xfc9   :  { %p2571_p3 = pnand %p2569_p2, %p2566_p1 }
 0xfcb   :  { %2574 = shalt.err (!%p2571_p3)
}
 0xfcc   :  { %2099 = dma.vmem_to_hbm [thread:$0]  %s2094_s28, 256, %s3048_s17, [#allocation4], %s2583_s21, %s2583_s21, %s2584_s22  }
 0xfcd   :  { %2579 = dma.done.wait [#allocation4], 256  }
 0xfce   :  { %2580 = vsyncadd [#allocation4], 4294967040 }
 0xfcf   :  { %2103 = vsyncpa [#allocation3], 1 }
 0xfd0   :  { %2104 = vsyncpa [#allocation6], 1 }
 0xfd1   :  { %2105 = vsyncpa [#allocation4], 1 }

</bundles_post_ra>
